<compile_context>
chip_gen: v6e
topology: v6e:2x2x1
jax: 0.10.0
libtpu: 0.0.40
codegen_flags: <defaults>
</compile_context>

<pallas_src>
import jax
import jax.numpy as jnp
from jax.experimental import pallas as pl
from jax.experimental.pallas import tpu as pltpu

BN_EPS = 1e-5  # PyTorch BatchNorm1d default eps
NEG_BIG = -1e30  # finite "-inf" for padded rows/cols (avoids inf-inf NaNs)


def _make_ttp_kernel(G, n_valid, edge_thresh, mxu_bf16):
    """Per-grid-step kernel over G graphs.  n_valid / edge_thresh are static."""

    def kernel(bg_ref, h_ref, w_ref, b_ref, m_ref, matrix_ref, mask_ref):
        bg = bg_ref[0]                      # SMEM scalar (proj_g bias)
        w = w_ref[...]                      # [in_dim, H2+H]  (BN-folded, fused)
        b = b_ref[...]                      # [1, H2+H]
        mfold = m_ref[...]                  # [H2+H, H2+H]    (proj_g weight fold)

        np_ = matrix_ref.shape[1]
        ri = jax.lax.broadcasted_iota(jnp.int32, (np_, np_), 0)
        ci = jax.lax.broadcasted_iota(jnp.int32, (np_, np_), 1)
        valid = (ri < n_valid) & (ci < n_valid)
        diag = ri == ci

        for g in range(G):                  # G is small & static (unrolled)
            hg = h_ref[g]                                              # [Np, in_dim]
            # fused projection = [proj_g1+BN | proj_g2+BN], then ReLU.
            # dropout(training=False) == identity.
            fused = jnp.maximum(
                jnp.dot(hg, w, preferred_element_type=jnp.float32) + b, 0.0)
            # Fold proj_g's weight: t = fused @ M, score = t @ fused^T
            #   (M built so t[:, H2+d] = sum_k wg[k] * p1[:, k*H+d], rest 0)
            t = jnp.dot(fused, mfold, preferred_element_type=jnp.float32)

            if mxu_bf16:   # bf16 MXU operands (v5e/v6e/v7x), f32 accumulation
                lhs, rhs = t.astype(jnp.bfloat16), fused.astype(jnp.bfloat16)
            else:          # exact f32 path
                lhs, rhs = t, fused
            score = jax.lax.dot_general(
                lhs, rhs, (((1,), (1,)), ((), ())),
                preferred_element_type=jnp.float32) + bg               # [Np, Np]

            # mm -= diag_embed(diag(mm)) -> zero diagonal; mask out padding.
            score = jnp.where(diag, 0.0, score)
            score = jnp.where(valid, score, NEG_BIG)

            # softmax(dim=0) * softmax(dim=1), per-axis max shifts (robust).
            # Pass 1 (columns): stage e/colsum into matrix_ref to limit liveness.
            e = jnp.exp(score - jnp.max(score, axis=0, keepdims=True))
            matrix_ref[g] = e * pl.reciprocal(
                jnp.sum(e, axis=0, keepdims=True), approx=False)
            # Pass 2 (rows): combine in place.
            e = jnp.exp(score - jnp.max(score, axis=1, keepdims=True))
            mat = matrix_ref[g] * e * pl.reciprocal(
                jnp.sum(e, axis=1, keepdims=True), approx=False)
            mat = jnp.where(valid, mat, 0.0)

            matrix_ref[g] = mat
            # edges torch.where(matrix > edge_thresh) would add, as int8 mask
            mask_ref[g] = (mat > edge_thresh).astype(jnp.int8)

    return kernel


def ttp_forward(h, params, edge_thresh, *, mxu_bf16=False, graphs_per_step=None):
    """h: [B, N, in_dim] node features (B graphs, each with N nodes).

    Returns (matrix, mask) of shape [B, Np, Np] with Np = N rounded up to 128;
    the valid region is [:, :N, :N] (padding is exactly zero).
    """
    B, N, in_dim = h.shape
    H = params["hidden_dim"]
    H2 = H * H
    W = H2 + H

    # lane-dense output: pad node count to a multiple of 128
    Np = max(128, int(pl.cdiv(N, 128)) * 128)
    if Np != N:
        h = jnp.pad(h, ((0, 0), (0, Np - N), (0, 0)))

    # --- constant-fold eval-mode BatchNorms into the (fused) linear ----------
    s1 = params["bn1_gamma"] * jax.lax.rsqrt(params["bn1_var"] + BN_EPS)
    w1 = params["w1"] * s1[None, :]                                          # [in, H2]
    b1 = ((params["b1"] - params["bn1_mean"]) * s1 + params["bn1_beta"]).reshape(1, H2)
    s2 = params["bn2_gamma"] * jax.lax.rsqrt(params["bn2_var"] + BN_EPS)
    w2 = params["w2"] * s2[None, :]                                          # [in, H]
    b2 = ((params["b2"] - params["bn2_mean"]) * s2 + params["bn2_beta"]).reshape(1, H)
    w_fused = jnp.concatenate([w1, w2], axis=1).astype(jnp.float32)          # [in, W]
    b_fused = jnp.concatenate([b1, b2], axis=1).astype(jnp.float32)          # [1, W]

    # Fold proj_g's weight into a constant M so score = (fused @ M) @ fused^T:
    #   M[k*H + d, H2 + d] = wg[k], everything else 0.
    wg = params["proj_g_w"].reshape(H).astype(jnp.float32)
    mfold = jnp.zeros((W, W), jnp.float32).at[:H2, H2:].set(
        jnp.kron(wg.reshape(H, 1), jnp.eye(H, dtype=jnp.float32)))
    bg = params["proj_g_b"].reshape(1).astype(jnp.float32)                   # SMEM scalar

    # --- graphs per grid step (amortize per-step overhead, fit VMEM) ---------
    per_graph_bytes = 2 * (Np * Np * 5 + Np * in_dim * 4) + 3 * Np * Np * 4
    G = graphs_per_step
    if G is None:
        G = max(1, min(B, 8, (24 << 20) // per_graph_bytes))
        if B >= 2:
            G = max(1, min(G, B // 2))   # keep >=2 grid steps for megacore (v7x)
    G = max(1, min(G, B))
    while B % G:
        G -= 1
    steps = B // G

    est_vmem = ((in_dim * W + W + W * W) * 4          # resident weights
                + 2 * G * (Np * Np * 5 + Np * in_dim * 4)  # double-buffered I/O
                + 4 * Np * Np * 4                     # live NxN temporaries
                + (4 << 20))                          # slack
    vmem_limit = int(min(64 << 20, max(32 << 20, 2 * est_vmem)))

    kernel = _make_ttp_kernel(G, N, float(edge_thresh), mxu_bf16)

    def resident(shape):   # weights: same block every step -> stay in VMEM
        return pl.BlockSpec(shape, lambda b: (0,) * len(shape))

    matrix, mask = pl.pallas_call(
        kernel,
        grid=(steps,),
        in_specs=[
            pl.BlockSpec(memory_space=pltpu.MemorySpace.SMEM),       # bg (scalar)
            pl.BlockSpec((G, Np, in_dim), lambda b: (b, 0, 0)),      # h
            resident((in_dim, W)),                                   # fused weight
            resident((1, W)),                                        # fused bias
            resident((W, W)),                                        # proj_g fold
        ],
        out_specs=(pl.BlockSpec((G, Np, Np), lambda b: (b, 0, 0)),
                   pl.BlockSpec((G, Np, Np), lambda b: (b, 0, 0))),
        out_shape=(jax.ShapeDtypeStruct((B, Np, Np), jnp.float32),
                   jax.ShapeDtypeStruct((B, Np, Np), jnp.int8)),
        compiler_params=pltpu.CompilerParams(
            dimension_semantics=("parallel",),       # shards graphs across TCs
            vmem_limit_bytes=vmem_limit),
    )(bg, h, w_fused, b_fused, mfold)
    return matrix, mask


def ttp_reference(h_batched, params, edge_thresh):
    """Pure-JAX literal transcription of the PyTorch forward (per graph)."""
    H = params["hidden_dim"]

    def one(h):
        N = h.shape[0]

        def bn(x, g, b, m, v):
            return (x - m) / jnp.sqrt(v + BN_EPS) * g + b

        p1 = jnp.maximum(bn(h @ params["w1"] + params["b1"], params["bn1_gamma"],
                            params["bn1_beta"], params["bn1_mean"], params["bn1_var"]), 0.0)
        p2 = jnp.maximum(bn(h @ params["w2"] + params["b2"], params["bn2_gamma"],
                            params["bn2_beta"], params["bn2_mean"], params["bn2_var"]), 0.0)
        mm = p1.reshape(N * H, H) @ p2.T                        # [N*H, N]
        mm3 = jnp.transpose(mm.reshape(N, H, N), (0, 2, 1))     # [N, N, H]
        score = mm3 @ params["proj_g_w"].reshape(H) + params["proj_g_b"][0]
        score = score - jnp.diag(jnp.diag(score))
        matrix = jax.nn.softmax(score, axis=0) * jax.nn.softmax(score, axis=1)
        return matrix, (matrix > edge_thresh).astype(jnp.int8)

    outs = [one(h_batched[b]) for b in range(h_batched.shape[0])]
    return jnp.stack([o[0] for o in outs]), jnp.stack([o[1] for o in outs])


if __name__ == "__main__":
    B, N, in_dim, hidden_dim = 4, 16, 8, 8
    edge_thresh = 0.02
    H2 = hidden_dim * hidden_dim

    key = jax.random.PRNGKey(0)
    ks = jax.random.split(key, 16)

    params = dict(
        hidden_dim=hidden_dim,
        # Linear weights, pre-transposed to [in_features, out_features]
        w1=jax.random.normal(ks[0], (in_dim, H2), jnp.float32) * 0.2,
        b1=jax.random.normal(ks[1], (H2,), jnp.float32) * 0.05,
        w2=jax.random.normal(ks[2], (in_dim, hidden_dim), jnp.float32) * 0.2,
        b2=jax.random.normal(ks[3], (hidden_dim,), jnp.float32) * 0.05,
        # non-trivial eval-mode BatchNorm stats (exercise the BN folding)
        bn1_gamma=1.0 + 0.1 * jax.random.normal(ks[4], (H2,), jnp.float32),
        bn1_beta=0.1 * jax.random.normal(ks[5], (H2,), jnp.float32),
        bn1_mean=0.1 * jax.random.normal(ks[6], (H2,), jnp.float32),
        bn1_var=0.5 + jnp.abs(jax.random.normal(ks[7], (H2,), jnp.float32)) * 0.5,
        bn2_gamma=1.0 + 0.1 * jax.random.normal(ks[8], (hidden_dim,), jnp.float32),
        bn2_beta=0.1 * jax.random.normal(ks[9], (hidden_dim,), jnp.float32),
        bn2_mean=0.1 * jax.random.normal(ks[10], (hidden_dim,), jnp.float32),
        bn2_var=0.5 + jnp.abs(jax.random.normal(ks[11], (hidden_dim,), jnp.float32)) * 0.5,
        # proj_g: Linear(hidden_dim, 1)
        proj_g_w=jax.random.normal(ks[12], (1, hidden_dim), jnp.float32) * 0.3,
        proj_g_b=jax.random.normal(ks[13], (1,), jnp.float32) * 0.05,
    )

    # node features of B graphs with N nodes each (g.ndata['feat'] per graph)
    h = jax.random.normal(ks[14], (B, N, in_dim), jnp.float32)

    # exact f32 path
    matrix, mask = ttp_forward(h, params, edge_thresh)
    jax.block_until_ready((matrix, mask))

    ref_matrix, ref_mask = ttp_reference(h, params, edge_thresh)
    mat_v = matrix[:, :N, :N]
    msk_v = mask[:, :N, :N]
    assert jnp.allclose(mat_v, ref_matrix, rtol=1e-4, atol=1e-5), "matrix mismatch"
    assert jnp.array_equal(msk_v, ref_mask), "mask mismatch"
    # padding must be exactly zero (lane-dense output, masked softmax)
    assert float(jnp.abs(matrix[:, N:, :]).max()) == 0.0
    assert float(jnp.abs(matrix[:, :, N:]).max()) == 0.0

    # bf16-MXU path (v5e/v6e/v7x fast path): looser tolerance, no exact-mask check
    matrix_bf, mask_bf = ttp_forward(h, params, edge_thresh, mxu_bf16=True)
    jax.block_until_ready((matrix_bf, mask_bf))
    assert jnp.allclose(matrix_bf[:, :N, :N], ref_matrix, rtol=0.1, atol=0.01), \
        "bf16 matrix mismatch"

    print("KERNEL_OK")
</pallas_src>

<mosaic_0001>
module attributes {stable_mosaic.version = 11 : i64} {
  func.func @kernel(%arg0: i32, %arg1: memref<1xf32, #tpu.memory_space<smem>>, %arg2: memref<2x128x8xf32, #tpu.memory_space<vmem>>, %arg3: memref<8x72xf32, #tpu.memory_space<vmem>>, %arg4: memref<1x72xf32, #tpu.memory_space<vmem>>, %arg5: memref<72x72xf32, #tpu.memory_space<vmem>>, %arg6: memref<2x128x128xf32, #tpu.memory_space<vmem>>, %arg7: memref<2x128x128xi8, #tpu.memory_space<vmem>>) attributes {dimension_semantics = [#tpu.dimension_semantics<parallel>], iteration_bounds = array<i64: 2>, scalar_prefetch = 0 : i64, scratch_operands = 0 : i64, tpu.core_type = #tpu.core_type<tc>, window_params = [{transform_indices = @transform_0, window_bounds = array<i64: 1>}, {transform_indices = @transform_1, window_bounds = array<i64: 2, 128, 8>}, {pipeline_mode = #tpu.pipeline_mode<synchronous>, transform_indices = @transform_2, window_bounds = array<i64: 8, 72>}, {pipeline_mode = #tpu.pipeline_mode<synchronous>, transform_indices = @transform_3, window_bounds = array<i64: 1, 72>}, {pipeline_mode = #tpu.pipeline_mode<synchronous>, transform_indices = @transform_4, window_bounds = array<i64: 72, 72>}, {transform_indices = @transform_5, window_bounds = array<i64: 2, 128, 128>}, {transform_indices = @transform_6, window_bounds = array<i64: 2, 128, 128>}]} {
    %c0 = arith.constant 0 : index
    %0 = memref.load %arg1[%c0] : memref<1xf32, #tpu.memory_space<smem>>
    %c0_0 = arith.constant 0 : index
    %c0_1 = arith.constant 0 : index
    %1 = vector.load %arg3[%c0_0, %c0_1] : memref<8x72xf32, #tpu.memory_space<vmem>>, vector<8x72xf32>
    %c0_2 = arith.constant 0 : index
    %c0_3 = arith.constant 0 : index
    %2 = vector.load %arg4[%c0_2, %c0_3] : memref<1x72xf32, #tpu.memory_space<vmem>>, vector<1x72xf32>
    %c0_4 = arith.constant 0 : index
    %c0_5 = arith.constant 0 : index
    %3 = vector.load %arg5[%c0_4, %c0_5] : memref<72x72xf32, #tpu.memory_space<vmem>>, vector<72x72xf32>
    %4 = tpu.iota {dimensions = array<i32: 0>} : vector<128x128xi32>
    %5 = tpu.iota {dimensions = array<i32: 1>} : vector<128x128xi32>
    %c16_i32 = arith.constant 16 : i32
    %6 = vector.broadcast %c16_i32 : i32 to vector<128x128xi32>
    %7 = arith.cmpi slt, %4, %6 : vector<128x128xi32>
    %c16_i32_6 = arith.constant 16 : i32
    %8 = vector.broadcast %c16_i32_6 : i32 to vector<128x128xi32>
    %9 = arith.cmpi slt, %5, %8 : vector<128x128xi32>
    %10 = arith.andi %7, %9 : vector<128x128xi1>
    %11 = arith.cmpi eq, %4, %5 : vector<128x128xi32>
    %c0_7 = arith.constant 0 : index
    %c0_8 = arith.constant 0 : index
    %c0_9 = arith.constant 0 : index
    %12 = vector.load %arg2[%c0_7, %c0_8, %c0_9] : memref<2x128x8xf32, #tpu.memory_space<vmem>>, vector<1x128x8xf32>
    %13 = vector.shape_cast %12 : vector<1x128x8xf32> to vector<128x8xf32>
    %cst = arith.constant dense<0.000000e+00> : vector<128x72xf32>
    %14 = tpu.matmul %13, %1, %cst {dimension_numbers = #tpu.dot_dimension_numbers<[1], [0], [0], [1], [0, 0, 1, 1], [], []>} : vector<128x8xf32>, vector<8x72xf32>, vector<128x72xf32> -> vector<128x72xf32>
    %15 = vector.broadcast %2 : vector<1x72xf32> to vector<128x72xf32>
    %16 = arith.addf %14, %15 : vector<128x72xf32>
    %cst_10 = arith.constant 0.000000e+00 : f32
    %17 = vector.broadcast %cst_10 : f32 to vector<128x72xf32>
    %18 = arith.maximumf %16, %17 : vector<128x72xf32>
    %cst_11 = arith.constant dense<0.000000e+00> : vector<128x72xf32>
    %19 = tpu.matmul %18, %3, %cst_11 {dimension_numbers = #tpu.dot_dimension_numbers<[1], [0], [0], [1], [0, 0, 1, 1], [], []>} : vector<128x72xf32>, vector<72x72xf32>, vector<128x72xf32> -> vector<128x72xf32>
    %cst_12 = arith.constant dense<0.000000e+00> : vector<128x128xf32>
    %20 = tpu.matmul %19, %18, %cst_12 {dimension_numbers = #tpu.dot_dimension_numbers<[1], [1], [0], [0], [0, 0, 1, 0], [], []>} : vector<128x72xf32>, vector<128x72xf32>, vector<128x128xf32> -> vector<128x128xf32>
    %21 = vector.broadcast %0 : f32 to vector<128x128xf32>
    %22 = arith.addf %20, %21 : vector<128x128xf32>
    %cst_13 = arith.constant 0.000000e+00 : f32
    %23 = vector.broadcast %cst_13 : f32 to vector<128x128xf32>
    %24 = arith.select %11, %23, %22 : vector<128x128xi1>, vector<128x128xf32>
    %cst_14 = arith.constant -1.000000e+30 : f32
    %25 = vector.broadcast %cst_14 : f32 to vector<128x128xf32>
    %26 = arith.select %10, %24, %25 : vector<128x128xi1>, vector<128x128xf32>
    %cst_15 = arith.constant dense<0xFF800000> : vector<128xf32>
    %27 = vector.multi_reduction <maximumf>, %26, %cst_15 [0] : vector<128x128xf32> to vector<128xf32>
    %28 = vector.shape_cast %27 : vector<128xf32> to vector<1x128xf32>
    %29 = vector.broadcast %28 : vector<1x128xf32> to vector<128x128xf32>
    %30 = arith.subf %26, %29 : vector<128x128xf32>
    %31 = math.exp %30 : vector<128x128xf32>
    %cst_16 = arith.constant dense<0.000000e+00> : vector<128xf32>
    %32 = vector.multi_reduction <add>, %31, %cst_16 [0] : vector<128x128xf32> to vector<128xf32>
    %33 = vector.shape_cast %32 : vector<128xf32> to vector<1x128xf32>
    %34 = tpu.reciprocal %33 : vector<1x128xf32> -> vector<1x128xf32>
    %35 = vector.broadcast %34 : vector<1x128xf32> to vector<128x128xf32>
    %36 = arith.mulf %31, %35 : vector<128x128xf32>
    %c0_17 = arith.constant 0 : index
    %c0_18 = arith.constant 0 : index
    %c0_19 = arith.constant 0 : index
    %37 = vector.load %arg6[%c0_17, %c0_18, %c0_19] : memref<2x128x128xf32, #tpu.memory_space<vmem>>, vector<1x128x128xf32>
    %38 = vector.shape_cast %37 : vector<1x128x128xf32> to vector<128x128xf32>
    %39 = vector.shape_cast %36 : vector<128x128xf32> to vector<1x128x128xf32>
    tpu.vector_store %arg6[%c0_17, %c0_18, %c0_19], %39 {strides = array<i32>} : memref<2x128x128xf32, #tpu.memory_space<vmem>>, vector<1x128x128xf32>,
    %cst_20 = arith.constant dense<0xFF800000> : vector<128xf32>
    %40 = vector.multi_reduction <maximumf>, %26, %cst_20 [1] : vector<128x128xf32> to vector<128xf32>
    %41 = vector.shape_cast %40 : vector<128xf32> to vector<128x1xf32>
    %42 = vector.broadcast %41 : vector<128x1xf32> to vector<128x128xf32>
    %43 = arith.subf %26, %42 : vector<128x128xf32>
    %44 = math.exp %43 : vector<128x128xf32>
    %c0_21 = arith.constant 0 : index
    %c0_22 = arith.constant 0 : index
    %c0_23 = arith.constant 0 : index
    %45 = vector.load %arg6[%c0_21, %c0_22, %c0_23] : memref<2x128x128xf32, #tpu.memory_space<vmem>>, vector<1x128x128xf32>
    %46 = vector.shape_cast %45 : vector<1x128x128xf32> to vector<128x128xf32>
    %47 = arith.mulf %46, %44 : vector<128x128xf32>
    %cst_24 = arith.constant dense<0.000000e+00> : vector<128xf32>
    %48 = vector.multi_reduction <add>, %44, %cst_24 [1] : vector<128x128xf32> to vector<128xf32>
    %49 = vector.shape_cast %48 : vector<128xf32> to vector<128x1xf32>
    %50 = tpu.reciprocal %49 : vector<128x1xf32> -> vector<128x1xf32>
    %51 = vector.broadcast %50 : vector<128x1xf32> to vector<128x128xf32>
    %52 = arith.mulf %47, %51 : vector<128x128xf32>
    %cst_25 = arith.constant 0.000000e+00 : f32
    %53 = vector.broadcast %cst_25 : f32 to vector<128x128xf32>
    %54 = arith.select %10, %52, %53 : vector<128x128xi1>, vector<128x128xf32>
    %c0_26 = arith.constant 0 : index
    %c0_27 = arith.constant 0 : index
    %c0_28 = arith.constant 0 : index
    %55 = vector.load %arg6[%c0_26, %c0_27, %c0_28] : memref<2x128x128xf32, #tpu.memory_space<vmem>>, vector<1x128x128xf32>
    %56 = vector.shape_cast %55 : vector<1x128x128xf32> to vector<128x128xf32>
    %57 = vector.shape_cast %54 : vector<128x128xf32> to vector<1x128x128xf32>
    tpu.vector_store %arg6[%c0_26, %c0_27, %c0_28], %57 {strides = array<i32>} : memref<2x128x128xf32, #tpu.memory_space<vmem>>, vector<1x128x128xf32>,
    %cst_29 = arith.constant 2.000000e-02 : f32
    %58 = vector.broadcast %cst_29 : f32 to vector<128x128xf32>
    %59 = arith.cmpf ogt, %54, %58 : vector<128x128xf32>
    %60 = arith.extui %59 : vector<128x128xi1> to vector<128x128xi8>
    %c0_30 = arith.constant 0 : index
    %c0_31 = arith.constant 0 : index
    %c0_32 = arith.constant 0 : index
    %61 = vector.load %arg7[%c0_30, %c0_31, %c0_32] : memref<2x128x128xi8, #tpu.memory_space<vmem>>, vector<1x128x128xi8>
    %62 = vector.shape_cast %61 : vector<1x128x128xi8> to vector<128x128xi8>
    %63 = vector.shape_cast %60 : vector<128x128xi8> to vector<1x128x128xi8>
    tpu.vector_store %arg7[%c0_30, %c0_31, %c0_32], %63 {strides = array<i32>} : memref<2x128x128xi8, #tpu.memory_space<vmem>>, vector<1x128x128xi8>,
    %c1 = arith.constant 1 : index
    %c0_33 = arith.constant 0 : index
    %c0_34 = arith.constant 0 : index
    %64 = vector.load %arg2[%c1, %c0_33, %c0_34] : memref<2x128x8xf32, #tpu.memory_space<vmem>>, vector<1x128x8xf32>
    %65 = vector.shape_cast %64 : vector<1x128x8xf32> to vector<128x8xf32>
    %cst_35 = arith.constant dense<0.000000e+00> : vector<128x72xf32>
    %66 = tpu.matmul %65, %1, %cst_35 {dimension_numbers = #tpu.dot_dimension_numbers<[1], [0], [0], [1], [0, 0, 1, 1], [], []>} : vector<128x8xf32>, vector<8x72xf32>, vector<128x72xf32> -> vector<128x72xf32>
    %67 = vector.broadcast %2 : vector<1x72xf32> to vector<128x72xf32>
    %68 = arith.addf %66, %67 : vector<128x72xf32>
    %cst_36 = arith.constant 0.000000e+00 : f32
    %69 = vector.broadcast %cst_36 : f32 to vector<128x72xf32>
    %70 = arith.maximumf %68, %69 : vector<128x72xf32>
    %cst_37 = arith.constant dense<0.000000e+00> : vector<128x72xf32>
    %71 = tpu.matmul %70, %3, %cst_37 {dimension_numbers = #tpu.dot_dimension_numbers<[1], [0], [0], [1], [0, 0, 1, 1], [], []>} : vector<128x72xf32>, vector<72x72xf32>, vector<128x72xf32> -> vector<128x72xf32>
    %cst_38 = arith.constant dense<0.000000e+00> : vector<128x128xf32>
    %72 = tpu.matmul %71, %70, %cst_38 {dimension_numbers = #tpu.dot_dimension_numbers<[1], [1], [0], [0], [0, 0, 1, 0], [], []>} : vector<128x72xf32>, vector<128x72xf32>, vector<128x128xf32> -> vector<128x128xf32>
    %73 = vector.broadcast %0 : f32 to vector<128x128xf32>
    %74 = arith.addf %72, %73 : vector<128x128xf32>
    %cst_39 = arith.constant 0.000000e+00 : f32
    %75 = vector.broadcast %cst_39 : f32 to vector<128x128xf32>
    %76 = arith.select %11, %75, %74 : vector<128x128xi1>, vector<128x128xf32>
    %cst_40 = arith.constant -1.000000e+30 : f32
    %77 = vector.broadcast %cst_40 : f32 to vector<128x128xf32>
    %78 = arith.select %10, %76, %77 : vector<128x128xi1>, vector<128x128xf32>
    %cst_41 = arith.constant dense<0xFF800000> : vector<128xf32>
    %79 = vector.multi_reduction <maximumf>, %78, %cst_41 [0] : vector<128x128xf32> to vector<128xf32>
    %80 = vector.shape_cast %79 : vector<128xf32> to vector<1x128xf32>
    %81 = vector.broadcast %80 : vector<1x128xf32> to vector<128x128xf32>
    %82 = arith.subf %78, %81 : vector<128x128xf32>
    %83 = math.exp %82 : vector<128x128xf32>
    %cst_42 = arith.constant dense<0.000000e+00> : vector<128xf32>
    %84 = vector.multi_reduction <add>, %83, %cst_42 [0] : vector<128x128xf32> to vector<128xf32>
    %85 = vector.shape_cast %84 : vector<128xf32> to vector<1x128xf32>
    %86 = tpu.reciprocal %85 : vector<1x128xf32> -> vector<1x128xf32>
    %87 = vector.broadcast %86 : vector<1x128xf32> to vector<128x128xf32>
    %88 = arith.mulf %83, %87 : vector<128x128xf32>
    %c1_43 = arith.constant 1 : index
    %c0_44 = arith.constant 0 : index
    %c0_45 = arith.constant 0 : index
    %89 = vector.load %arg6[%c1_43, %c0_44, %c0_45] : memref<2x128x128xf32, #tpu.memory_space<vmem>>, vector<1x128x128xf32>
    %90 = vector.shape_cast %89 : vector<1x128x128xf32> to vector<128x128xf32>
    %91 = vector.shape_cast %88 : vector<128x128xf32> to vector<1x128x128xf32>
    tpu.vector_store %arg6[%c1_43, %c0_44, %c0_45], %91 {strides = array<i32>} : memref<2x128x128xf32, #tpu.memory_space<vmem>>, vector<1x128x128xf32>,
    %cst_46 = arith.constant dense<0xFF800000> : vector<128xf32>
    %92 = vector.multi_reduction <maximumf>, %78, %cst_46 [1] : vector<128x128xf32> to vector<128xf32>
    %93 = vector.shape_cast %92 : vector<128xf32> to vector<128x1xf32>
    %94 = vector.broadcast %93 : vector<128x1xf32> to vector<128x128xf32>
    %95 = arith.subf %78, %94 : vector<128x128xf32>
    %96 = math.exp %95 : vector<128x128xf32>
    %c1_47 = arith.constant 1 : index
    %c0_48 = arith.constant 0 : index
    %c0_49 = arith.constant 0 : index
    %97 = vector.load %arg6[%c1_47, %c0_48, %c0_49] : memref<2x128x128xf32, #tpu.memory_space<vmem>>, vector<1x128x128xf32>
    %98 = vector.shape_cast %97 : vector<1x128x128xf32> to vector<128x128xf32>
    %99 = arith.mulf %98, %96 : vector<128x128xf32>
    %cst_50 = arith.constant dense<0.000000e+00> : vector<128xf32>
    %100 = vector.multi_reduction <add>, %96, %cst_50 [1] : vector<128x128xf32> to vector<128xf32>
    %101 = vector.shape_cast %100 : vector<128xf32> to vector<128x1xf32>
    %102 = tpu.reciprocal %101 : vector<128x1xf32> -> vector<128x1xf32>
    %103 = vector.broadcast %102 : vector<128x1xf32> to vector<128x128xf32>
    %104 = arith.mulf %99, %103 : vector<128x128xf32>
    %cst_51 = arith.constant 0.000000e+00 : f32
    %105 = vector.broadcast %cst_51 : f32 to vector<128x128xf32>
    %106 = arith.select %10, %104, %105 : vector<128x128xi1>, vector<128x128xf32>
    %c1_52 = arith.constant 1 : index
    %c0_53 = arith.constant 0 : index
    %c0_54 = arith.constant 0 : index
    %107 = vector.load %arg6[%c1_52, %c0_53, %c0_54] : memref<2x128x128xf32, #tpu.memory_space<vmem>>, vector<1x128x128xf32>
    %108 = vector.shape_cast %107 : vector<1x128x128xf32> to vector<128x128xf32>
    %109 = vector.shape_cast %106 : vector<128x128xf32> to vector<1x128x128xf32>
    tpu.vector_store %arg6[%c1_52, %c0_53, %c0_54], %109 {strides = array<i32>} : memref<2x128x128xf32, #tpu.memory_space<vmem>>, vector<1x128x128xf32>,
    %cst_55 = arith.constant 2.000000e-02 : f32
    %110 = vector.broadcast %cst_55 : f32 to vector<128x128xf32>
    %111 = arith.cmpf ogt, %106, %110 : vector<128x128xf32>
    %112 = arith.extui %111 : vector<128x128xi1> to vector<128x128xi8>
    %c1_56 = arith.constant 1 : index
    %c0_57 = arith.constant 0 : index
    %c0_58 = arith.constant 0 : index
    %113 = vector.load %arg7[%c1_56, %c0_57, %c0_58] : memref<2x128x128xi8, #tpu.memory_space<vmem>>, vector<1x128x128xi8>
    %114 = vector.shape_cast %113 : vector<1x128x128xi8> to vector<128x128xi8>
    %115 = vector.shape_cast %112 : vector<128x128xi8> to vector<1x128x128xi8>
    tpu.vector_store %arg7[%c1_56, %c0_57, %c0_58], %115 {strides = array<i32>} : memref<2x128x128xi8, #tpu.memory_space<vmem>>, vector<1x128x128xi8>,
    return
  }
  func.func @transform_0(%arg0: i32) -> i32 {
    %c0_i32 = arith.constant 0 : i32
    %c0_i32_0 = arith.constant 0 : i32
    return %c0_i32 : i32
  }
  func.func @transform_1(%arg0: i32) -> (i32, i32, i32) {
    %c0_i32 = arith.constant 0 : i32
    %c0_i32_0 = arith.constant 0 : i32
    %c0_i32_1 = arith.constant 0 : i32
    return %arg0, %c0_i32, %c0_i32_0 : i32, i32, i32
  }
  func.func @transform_2(%arg0: i32) -> (i32, i32) {
    %c0_i32 = arith.constant 0 : i32
    %c0_i32_0 = arith.constant 0 : i32
    %c0_i32_1 = arith.constant 0 : i32
    return %c0_i32, %c0_i32_0 : i32, i32
  }
  func.func @transform_3(%arg0: i32) -> (i32, i32) {
    %c0_i32 = arith.constant 0 : i32
    %c0_i32_0 = arith.constant 0 : i32
    %c0_i32_1 = arith.constant 0 : i32
    return %c0_i32, %c0_i32_0 : i32, i32
  }
  func.func @transform_4(%arg0: i32) -> (i32, i32) {
    %c0_i32 = arith.constant 0 : i32
    %c0_i32_0 = arith.constant 0 : i32
    %c0_i32_1 = arith.constant 0 : i32
    return %c0_i32, %c0_i32_0 : i32, i32
  }
  func.func @transform_5(%arg0: i32) -> (i32, i32, i32) {
    %c0_i32 = arith.constant 0 : i32
    %c0_i32_0 = arith.constant 0 : i32
    %c0_i32_1 = arith.constant 0 : i32
    return %arg0, %c0_i32, %c0_i32_0 : i32, i32, i32
  }
  func.func @transform_6(%arg0: i32) -> (i32, i32, i32) {
    %c0_i32 = arith.constant 0 : i32
    %c0_i32_0 = arith.constant 0 : i32
    %c0_i32_1 = arith.constant 0 : i32
    return %arg0, %c0_i32, %c0_i32_0 : i32, i32, i32
  }
}

</mosaic_0001>

<bundles_post_ra>
// kernel: tpu_custom_call.1
= control target key start
LH: loop header
LB: loop body
LE: loop exit
PB: predicated region body
PF: predicated region fallthrough
CT: control target
= control target key end

     0   :  { %s4151_s0 = inlined_call_operand.<no memory space> [shape: f32[1], index: 0, kind: input, shape index: {}]   ;;  %s4152_s1 = inlined_call_operand.vmem [shape: f32[4,128,8], index: 1, kind: input, shape index: {}]   ;;  %s4153_s2 = inlined_call_operand.vmem [shape: f32[8,72], index: 2, kind: input, shape index: {}]   ;;  %s4154_s3 = inlined_call_operand.vmem [shape: f32[1,72], index: 3, kind: input, shape index: {}]   ;;  %s4155_s4 = inlined_call_operand.vmem [shape: f32[72,72], index: 4, kind: input, shape index: {}]   ;;  %s4156_s5 = inlined_call_operand.hbm [shape: f32[4,128,128], index: 5, kind: output, shape index: {0}]   ;;  %s4157_s6 = inlined_call_operand.hbm [shape: s8[4,128,128], index: 6, kind: output, shape index: {1}]  }
   0x1   :  { %12 = sst [smem:[#allocation2]] %s4151_s0 }
   0x2   :  { %13 = vsyncpa [#allocation4], 0 }
   0x3   :  { %15 = vsyncpa [#allocation4 + $0x1], 0 }
   0x4   :  { %16 = vsyncpa [#allocation6], 0 }
   0x5   :  { %18 = vsyncpa [#allocation6 + $0x1], 0  ;;  %s3381_s23 = smov 0   ;;  %s3383_s24 = smov 0  }
   0x6   :  { %s3385_s25 = smov 0   ;;  %s3387_s26 = smov 0  }
   0x7 LB: > { %s3402_s0 = sadd.s32 4294967295, %s3334_s26   ;;  %s2514_s27 = sadd.s32 4294967294, %s3334_s26   ;;  %s3334_s26 = sphi %s3387_s26, %s4167_s26   ;;  %s3330_s25 = sphi %s3385_s25, %s4166_s25   ;;  %s3326_s24 = sphi %s3383_s24, %s4165_s24   ;;  %s3322_s23 = sphi %s3381_s23, %s4164_s23  }
   0x8   : > { %s3406_s28 = sadd.s32 1, %s3334_s26   ;;  %s141_s29 = sadd.s32 1, %s3330_s25 }
   0x9   : > { %s138_s30 = ssub.s32 %s3334_s26, %s3406_s28  ;;  %p151_p0 = scmp.ne.s32.totalorder %s3330_s25, %s3326_s24 }
   0xa   : > { %p139_p1 = scmp.eq.s32.totalorder %s138_s30, 0  ;;  %p152_p2 = scmp.eq.s32.totalorder %s3402_s0, 1 }
   0xb   : > { %p157_p3 = scmp.ne.s32.totalorder %s3326_s24, %s3322_s23  ;;  %p158_p4 = scmp.eq.s32.totalorder %s2514_s27, 1 }
   0xc   : > { %s3417_s7 = scalar_select %p139_p1, %s3330_s25, %s141_s29  }
   0xd   : > { %p3419_p5 = por %p152_p2, %p151_p0  ;;  %p3423_p6 = por %p158_p4, %p157_p3 }
   0xe   : > { %p2517_p7 = scmp.ge.s32.totalorder %s3334_s26, 1  ;;  %p224_p8 = scmp.lt.s32.totalorder %s3334_s26, 3 }
  0x10   : > { %p225_p9 = pnand %p2517_p7, %p224_p8 }
  0x11   : > { %s2520_s12 = sshll.u32 (!%p225_p9), %s3402_s0, 1  ;;  %s2732_s11 = sshll.u32 (!%p225_p9), %s3402_s0, 12 }
  0x12   : > { %228 = sbr.rel (%p225_p9) target bundleno = 1207 (0x4b7), region = 40  ;;  %p261_p10 = scmp.lt.s32.totalorder (!%p225_p9), %s2520_s12, 3 }
  0x13   : > { %s4054_s15 = scalar_lea.hbm (!%p225_p9), %s4156_s5, %s2732_s11  ;;  %s2734_s16 = sshll.u32 (!%p225_p9), %s3402_s0, 10 }
  0x14   : > { %s3339_s20 = smov (!%p225_p9), [#allocation3]  }
  0x17   : > { %v3432_v0 = vld [vmem:[%s4153_s2] sm:$0xff]  ;;  %v3443_v2 = vld [vmem:[%s4155_s4 + $0x38] sm:$0xff]  ;;  %v3452_v3 = vld [vmem:[%s4155_s4 + $0x30] sm:$0xff]  ;;  %s4169_s12 = smov (!%p261_p10, %s2520_s12), 3  ;;  %vm373_vm0 = vcmask 64512   ;;  %vm583_vm1 = vcmask 588800  }
  0x18   : > { %v3438_v1 = vld [vmem:[%s4155_s4 + $0x40] sm:$0xff]  ;;  %2883 = vmatprep.subr.mxu0 %v3432_v0  ;;  %v3459_v4 = vld [vmem:[%s4155_s4 + $0x28] sm:$0xff]  ;;  %s2730_s21 = sshll.u32 %s4169_s12, 7  ;;  %v3482_v9 = vld [vmem:[%s4155_s4 + $0x18] sm:$0xff]  ;;  %vm3337_vm5 = vmmov 0  }
  0x19   : > { %2909 = vmatprep.subr.mxu1 %v3438_v1  ;;  %2884 = vmatpush3.msra.mxu0 %v3432_v0  ;;  %s3465_s29 = scalar_lea.vmem %s4152_s1, %s2730_s21  ;;  %v3471_v5 = vld [vmem:[%s4155_s4 + $0x20] sm:$0xff]  ;;  %v3519_v23 = vld [vmem:[%s4155_s4 + $0x10] sm:$0xff]  ;;  %v3526_v24 = vld [vmem:[%s4155_s4 + $0x8] sm:$0xff]  ;;  %s3808_s21 = sand.u32 1, %s3326_s24  }
  0x1a   : > { %2910 = vmatpush3.msra.mxu1 %v3438_v1  ;;  %v351_v6 = vld [vmem:[%s3465_s29] sm:$0xff]  ;;  %v352_v7 = vld [vmem:[%s3465_s29 + $0x8] sm:$0xff]  ;;  %v353_v8 = vld [vmem:[%s3465_s29 + $0x10] sm:$0xff]  ;;  %s2518_s22 = sshll.u32 %s3808_s21, 8  ;;  %s2519_s30 = sshll.u32 %s3808_s21, 6 }
  0x1b   : > { %2911 = vmatprep.subr.mxu1 %v3443_v2  ;;  %2885 = vmatprep.mubr.msk.f32.mxu0 %vm373_vm0, %v351_v6  ;;  %v354_v10 = vld [vmem:[%s3465_s29 + $0x18] sm:$0xff]  ;;  %v355_v11 = vld [vmem:[%s3465_s29 + $0x20] sm:$0xff]  ;;  %v356_v12 = vld [vmem:[%s3465_s29 + $0x28] sm:$0xff]  ;;  %s3813_s27 = scalar_lea.vmem [#allocation3], %s2518_s22  ;;  %s4023_s10 = scalar_lea.vmem [#allocation5], %s2519_s30 }
  0x1c   : > { %2912 = vmatpush3.msra.mxu1 %v3443_v2  ;;  %2886 = vmatmul.mubr.msk.f32.vlgmr.msra.gmra.mxu0 %vm373_vm0, %v352_v7  ;;  %v357_v13 = vld [vmem:[%s3465_s29 + $0x30] sm:$0xff]  ;;  %v358_v14 = vld [vmem:[%s3465_s29 + $0x38] sm:$0xff]  ;;  %v359_v15 = vld [vmem:[%s3465_s29 + $0x40] sm:$0xff]  ;;  %s2403_s12 = sshll.u32 %s3813_s27, 4  ;;  %s2420_s17 = sshll.u32 %s4023_s10, 4  ;;  %s4056_s12 = int_to_ptr.vmem [resolvable:$true] %s2403_s12  ;;  %s4106_s17 = int_to_ptr.vmem [resolvable:$true] %s2420_s17 }
  0x1d   : > { %2913 = vmatprep.subr.mxu1 %v3452_v3  ;;  %2888 = vmatprep.mubr.msk.f32.mxu0 %vm373_vm0, %v353_v8  ;;  %v360_v16 = vld [vmem:[%s3465_s29 + $0x48] sm:$0xff]  ;;  %v361_v17 = vld [vmem:[%s3465_s29 + $0x50] sm:$0xff]  ;;  %v362_v18 = vld [vmem:[%s3465_s29 + $0x58] sm:$0xff]  ;;  %s2384_s18 = scalar_lea.sflag [#allocation4], %s3808_s21  ;;  %s3244_s19 = scalar_lea.vmem %s4056_s12, 4096 }
  0x1e   : > { %2914 = vmatpush3.msra.mxu1 %v3452_v3  ;;  %v363_v19 = vld [vmem:[%s3465_s29 + $0x60] sm:$0xff]  ;;  %v364_v20 = vld [vmem:[%s3465_s29 + $0x68] sm:$0xff]  ;;  %v365_v21 = vld [vmem:[%s3465_s29 + $0x70] sm:$0xff]  ;;  %p3245_p11 = scmp.ne.s32.totalorder %s4056_s12, %s3244_s19  ;;  %s3248_s22 = sshll.u32 %s3339_s20, 4  ;;  %s3249_s22 = int_to_ptr.vmem [resolvable:$false] %s3248_s22 }
  0x1f   : > { %2915 = vmatprep.subr.mxu1 %v3459_v4  ;;  %v366_v22 = vld [vmem:[%s3465_s29 + $0x78] sm:$0xff]  ;;  %v3533_v25 = vld [vmem:[%s4155_s4] sm:$0xff]  ;;  %vm4015_vm6 = vmpackc.low %vm3337_vm5, %vm3337_vm5  ;;  %p3251_p0 = scmp.lt.s32.totalorder %s4056_s12, %s3249_s22 }
  0x20   : > { %2916 = vmatpush3.msra.mxu1 %v3459_v4  ;;  %2889 = vmatmul.mubr.msk.f32.gmra.mxu0 %vm373_vm0, %v354_v10  ;;  %v3541_v26 = vld [vmem:[%s4154_s3] ss:$0 sm:$0xff]  ;;  %vm1355_vm7 = vmpackc.even %vm4015_vm6, %vm4015_vm6  ;;  %p3246_p12 = pnand %p3245_p11, %p3419_p5 }
  0x21   : > { %2917 = vmatprep.subr.mxu1 %v3471_v5  ;;  %2891 = vmatprep.mubr.msk.f32.mxu0 %vm373_vm0, %v355_v11 }
  0x22   : > { %2918 = vmatpush3.msra.mxu1 %v3471_v5  ;;  %p3247_p13 = pneg %p3246_p12 }
  0x23   : > { %2919 = vmatprep.subr.mxu1 %v3482_v9 }
  0x24   : > { %2920 = vmatpush3.msra.mxu1 %v3482_v9  ;;  %2892 = vmatmul.mubr.msk.f32.gmra.mxu0 %vm373_vm0, %v356_v12 }
  0x25   : > { %2894 = vmatprep.mubr.msk.f32.mxu0 %vm373_vm0, %v357_v13  ;;  %2921 = vmatprep.subr.mxu1 %v3519_v23 }
  0x26   : > { %2922 = vmatpush3.msra.mxu1 %v3519_v23 }
  0x27   : > { %2923 = vmatprep.subr.mxu1 %v3526_v24 }
  0x28   : > { %2895 = vmatmul.mubr.msk.f32.gmra.mxu0 %vm373_vm0, %v358_v14  ;;  %2924 = vmatpush3.msra.mxu1 %v3526_v24 }
  0x29   : > { %2897 = vmatprep.mubr.msk.f32.mxu0 %vm373_vm0, %v359_v15  ;;  %2925 = vmatprep.subr.mxu1 %v3533_v25 }
  0x2a   : > { %2926 = vmatpush3.msra.mxu1 %v3533_v25 }
  0x2b   : > { %3007 = vmatprep.subr.mxu1 %v3432_v0 }
  0x2c   : > { %2898 = vmatmul.mubr.msk.f32.gmra.mxu0 %vm373_vm0, %v360_v16 }
  0x2d   : > { %2900 = vmatprep.mubr.msk.f32.mxu0 %vm373_vm0, %v361_v17  ;;  %v2588_v17 = vld [vmem:[%s3465_s29 + $0x80] sm:$0xff] }
  0x30   : > { %2901 = vmatmul.mubr.msk.f32.gmra.mxu0 %vm373_vm0, %v362_v18  ;;  %v2589_v18 = vld [vmem:[%s3465_s29 + $0x88] sm:$0xff] }
  0x31   : > { %2903 = vmatprep.mubr.msk.f32.mxu0 %vm373_vm0, %v363_v19  ;;  %v2590_v19 = vld [vmem:[%s3465_s29 + $0x90] sm:$0xff] }
  0x34   : > { %2904 = vmatmul.mubr.msk.f32.gmra.mxu0 %vm373_vm0, %v364_v20  ;;  %v2591_v20 = vld [vmem:[%s3465_s29 + $0x98] sm:$0xff] }
  0x35   : > { %2906 = vmatprep.mubr.msk.f32.mxu0 %vm373_vm0, %v365_v21  ;;  %v2592_v21 = vld [vmem:[%s3465_s29 + $0xa0] sm:$0xff] }
  0x38   : > { %2907 = vmatmul.mubr.msk.f32.gmra.mxu0 %vm373_vm0, %v366_v22  ;;  %v2593_v22 = vld [vmem:[%s3465_s29 + $0xa8] sm:$0xff] }
  0xdc   : > { %v2887_v27 = vpop.f32.mrf.mxu0 }
  0xdd   : > { %v494_v28 = vadd.f32 %v2887_v27, %v3541_v26  ;;  %v2602_v27 = vld [vmem:[%s3465_s29 + $0xf0] sm:$0xff] }
  0xde   : > { %v488_v29 = vpop.f32.mrf.mxu0 }
  0xdf   : > { %v489_v30 = vadd.f32 %v3541_v26, %v488_v29  ;;  %v3547_v33 = vmax.f32 %v494_v28, 0.0 }
  0xe0   : > { %v2890_v31 = vpop.f32.mrf.mxu0 }
  0xe1   : > { %v3545_v32 = vmax.f32 %v489_v30, 0.0  ;;  %v504_v34 = vadd.f32 %v2890_v31, %v3541_v26 }
  0xe2   : > { %v498_v35 = vpop.f32.mrf.mxu0 }
  0xe3   : > { %v499_v36 = vadd.f32 %v3541_v26, %v498_v35  ;;  %2927 = vmatprep.mubr.msk.f32.mxu1 %vm583_vm1, %v3545_v32  ;;  %v3558_v39 = vmax.f32 %v504_v34, 0.0 }
  0xe4   : > { %v2893_v37 = vpop.f32.mrf.mxu0  ;;  %2928 = vmatmul.mubr.msk.f32.vlgmr.msra.gmra.mxu1 %vm583_vm1, %v3547_v33 }
  0xe5   : > { %v3555_v38 = vmax.f32 %v499_v36, 0.0  ;;  %3008 = vmatpush3.msra.mxu1 %v3432_v0  ;;  %v514_v40 = vadd.f32 %v2893_v37, %v3541_v26 }
  0xe6   : > { %v508_v41 = vpop.f32.mrf.mxu0  ;;  %3033 = vmatprep.subr.mxu1 %v3438_v1 }
  0xe7   : > { %v509_v42 = vadd.f32 %v3541_v26, %v508_v41  ;;  %2930 = vmatprep.mubr.msk.f32.mxu1 %vm583_vm1, %v3555_v38  ;;  %v3569_v45 = vmax.f32 %v514_v40, 0.0 }
  0xe8   : > { %v2896_v43 = vpop.f32.mrf.mxu0  ;;  %2931 = vmatmul.mubr.msk.f32.gmra.mxu1 %vm583_vm1, %v3558_v39 }
  0xe9   : > { %v3567_v44 = vmax.f32 %v509_v42, 0.0  ;;  %v524_v46 = vadd.f32 %v2896_v43, %v3541_v26 }
  0xea   : > { %v518_v47 = vpop.f32.mrf.mxu0 }
  0xeb   : > { %v519_v48 = vadd.f32 %v3541_v26, %v518_v47  ;;  %2933 = vmatprep.mubr.msk.f32.mxu1 %vm583_vm1, %v3567_v44  ;;  %v3579_v51 = vmax.f32 %v524_v46, 0.0 }
  0xec   : > { %v2899_v49 = vpop.f32.mrf.mxu0  ;;  %2934 = vmatmul.mubr.msk.f32.gmra.mxu1 %vm583_vm1, %v3569_v45 }
  0xed   : > { %v3577_v50 = vmax.f32 %v519_v48, 0.0  ;;  %v534_v52 = vadd.f32 %v2899_v49, %v3541_v26 }
  0xee   : > { %v528_v53 = vpop.f32.mrf.mxu0 }
  0xef   : > { %v529_v54 = vadd.f32 %v3541_v26, %v528_v53  ;;  %2936 = vmatprep.mubr.msk.f32.mxu1 %vm583_vm1, %v3577_v50  ;;  %v3589_v57 = vmax.f32 %v534_v52, 0.0 }
  0xf0   : > { %v2902_v55 = vpop.f32.mrf.mxu0  ;;  %2937 = vmatmul.mubr.msk.f32.gmra.mxu1 %vm583_vm1, %v3579_v51 }
  0xf1   : > { %v3587_v56 = vmax.f32 %v529_v54, 0.0  ;;  %v544_v58 = vadd.f32 %v2902_v55, %v3541_v26 }
  0xf2   : > { %v538_v59 = vpop.f32.mrf.mxu0 }
  0xf3   : > { %v539_v60 = vadd.f32 %v3541_v26, %v538_v59  ;;  %2939 = vmatprep.mubr.msk.f32.mxu1 %vm583_vm1, %v3587_v56  ;;  %v578_v63 = vmax.f32 %v544_v58, 0.0 }
  0xf4   : > { %v2905_v61 = vpop.f32.mrf.mxu0  ;;  %2940 = vmatmul.mubr.msk.f32.gmra.mxu1 %vm583_vm1, %v3589_v57 }
  0xf5   : > { %v577_v62 = vmax.f32 %v539_v60, 0.0  ;;  %v554_v0 = vadd.f32 %v2905_v61, %v3541_v26 }
  0xf6   : > { %v548_v6 = vpop.f32.mrf.mxu0 }
  0xf7   : > { %v549_v7 = vadd.f32 %v3541_v26, %v548_v6  ;;  %2942 = vmatprep.mubr.msk.f32.mxu1 %vm583_vm1, %v577_v62  ;;  %v580_v12 = vmax.f32 %v554_v0, 0.0 }
  0xf8   : > { %v2908_v8 = vpop.f32.mrf.mxu0  ;;  %2943 = vmatmul.mubr.msk.f32.gmra.mxu1 %vm583_vm1, %v578_v63 }
  0xf9   : > { %v579_v10 = vmax.f32 %v549_v7, 0.0  ;;  %v564_v11 = vadd.f32 %v2908_v8, %v3541_v26 }
  0xfa   : > { %v558_v13 = vpop.f32.mrf.mxu0 }
  0xfb   : > { %v582_v14 = vmax.f32 %v564_v11, 0.0  ;;  %v559_v15 = vadd.f32 %v3541_v26, %v558_v13  ;;  %2945 = vmatprep.mubr.msk.f32.mxu1 %vm583_vm1, %v579_v10 }
  0xfc   : > { %2946 = vmatmul.mubr.msk.f32.gmra.mxu1 %vm583_vm1, %v580_v12 }
  0xfd   : > { %v581_v16 = vmax.f32 %v559_v15, 0.0  ;;  %2951 = vmatprep.subr.msk.mxu0 %vm583_vm1, %v582_v14 }
  0xfe   : > { %2952 = vmatpush3.xpose.msk.msra.mxu0 %vm583_vm1, %v582_v14 }
  0xff   : > { %2948 = vmatprep.mubr.msk.f32.mxu1 %vm583_vm1, %v581_v16  ;;  %2953 = vmatprep.subr.msk.mxu0 %vm583_vm1, %v581_v16 }
 0x100   : > { %2949 = vmatmul.mubr.msk.f32.gmra.mxu1 %vm583_vm1, %v582_v14 }
 0x101   : > { %3009 = vmatprep.mubr.msk.f32.mxu1 %vm373_vm0, %v2588_v17 }
 0x102   : > { %2954 = vmatpush3.xpose.msk.msra.mxu0 %vm583_vm1, %v581_v16 }
 0x103   : > { %2955 = vmatprep.subr.msk.mxu0 %vm583_vm1, %v580_v12 }
 0x104   : > { %3010 = vmatmul.mubr.msk.f32.vlgmr.msra.gmra.mxu1 %vm373_vm0, %v2589_v18 }
 0x105   : > { %3012 = vmatprep.mubr.msk.f32.mxu1 %vm373_vm0, %v2590_v19  ;;  %3034 = vmatpush3.msra.mxu1 %v3438_v1  ;;  %v2594_v1 = vld [vmem:[%s3465_s29 + $0xb0] sm:$0xff] }
 0x106   : > { %2956 = vmatpush3.xpose.msk.msra.mxu0 %vm583_vm1, %v580_v12  ;;  %3035 = vmatprep.subr.mxu1 %v3443_v2 }
 0x107   : > { %2957 = vmatprep.subr.msk.mxu0 %vm583_vm1, %v579_v10  ;;  %3036 = vmatpush3.msra.mxu1 %v3443_v2  ;;  %v2595_v2 = vld [vmem:[%s3465_s29 + $0xb8] sm:$0xff] }
 0x108   : > { %3013 = vmatmul.mubr.msk.f32.gmra.mxu1 %vm373_vm0, %v2591_v20  ;;  %3037 = vmatprep.subr.mxu1 %v3452_v3 }
 0x109   : > { %3015 = vmatprep.mubr.msk.f32.mxu1 %vm373_vm0, %v2592_v21  ;;  %3038 = vmatpush3.msra.mxu1 %v3452_v3  ;;  %v2596_v3 = vld [vmem:[%s3465_s29 + $0xc0] sm:$0xff] }
 0x10a   : > { %2958 = vmatpush3.xpose.msk.msra.mxu0 %vm583_vm1, %v579_v10  ;;  %3039 = vmatprep.subr.mxu1 %v3459_v4 }
 0x10b   : > { %2959 = vmatprep.subr.msk.mxu0 %vm583_vm1, %v578_v63  ;;  %3040 = vmatpush3.msra.mxu1 %v3459_v4  ;;  %v2597_v4 = vld [vmem:[%s3465_s29 + $0xc8] sm:$0xff] }
 0x10c   : > { %3016 = vmatmul.mubr.msk.f32.gmra.mxu1 %vm373_vm0, %v2593_v22  ;;  %3041 = vmatprep.subr.mxu1 %v3471_v5 }
 0x10d   : > { %3018 = vmatprep.mubr.msk.f32.mxu1 %vm373_vm0, %v2594_v1  ;;  %3042 = vmatpush3.msra.mxu1 %v3471_v5  ;;  %v2598_v5 = vld [vmem:[%s3465_s29 + $0xd0] sm:$0xff] }
 0x10e   : > { %2960 = vmatpush3.xpose.msk.msra.mxu0 %vm583_vm1, %v578_v63  ;;  %3043 = vmatprep.subr.mxu1 %v3482_v9 }
 0x10f   : > { %2961 = vmatprep.subr.msk.mxu0 %vm583_vm1, %v577_v62  ;;  %3044 = vmatpush3.msra.mxu1 %v3482_v9  ;;  %v2599_v9 = vld [vmem:[%s3465_s29 + $0xd8] sm:$0xff] }
 0x110   : > { %3019 = vmatmul.mubr.msk.f32.gmra.mxu1 %vm373_vm0, %v2595_v2  ;;  %3045 = vmatprep.subr.mxu1 %v3519_v23 }
 0x111   : > { %3021 = vmatprep.mubr.msk.f32.mxu1 %vm373_vm0, %v2596_v3  ;;  %3046 = vmatpush3.msra.mxu1 %v3519_v23  ;;  %v2600_v23 = vld [vmem:[%s3465_s29 + $0xe0] sm:$0xff] }
 0x112   : > { %2962 = vmatpush3.xpose.msk.msra.mxu0 %vm583_vm1, %v577_v62  ;;  %3047 = vmatprep.subr.mxu1 %v3526_v24 }
 0x113   : > { %2963 = vmatprep.subr.msk.mxu0 %vm583_vm1, %v3589_v57  ;;  %3048 = vmatpush3.msra.mxu1 %v3526_v24  ;;  %v2601_v24 = vld [vmem:[%s3465_s29 + $0xe8] sm:$0xff] }
 0x114   : > { %3022 = vmatmul.mubr.msk.f32.gmra.mxu1 %vm373_vm0, %v2597_v4  ;;  %3049 = vmatprep.subr.mxu1 %v3533_v25 }
 0x115   : > { %3024 = vmatprep.mubr.msk.f32.mxu1 %vm373_vm0, %v2598_v5  ;;  %3050 = vmatpush3.msra.mxu1 %v3533_v25  ;;  %v2603_v25 = vld [vmem:[%s3465_s29 + $0xf8] sm:$0xff]  ;;  %s271_s29 = sld [smem:[#allocation2]] }
 0x116   : > { %2964 = vmatpush3.xpose.msk.msra.mxu0 %vm583_vm1, %v3589_v57 }
 0x117   : > { %2965 = vmatprep.subr.msk.mxu0 %vm583_vm1, %v3587_v56 }
 0x118   : > { %3025 = vmatmul.mubr.msk.f32.gmra.mxu1 %vm373_vm0, %v2599_v9 }
 0x119   : > { %3027 = vmatprep.mubr.msk.f32.mxu1 %vm373_vm0, %v2600_v23 }
 0x11a   : > { %2966 = vmatpush3.xpose.msk.msra.mxu0 %vm583_vm1, %v3587_v56 }
 0x11b   : > { %2967 = vmatprep.subr.msk.mxu0 %vm583_vm1, %v3579_v51 }
 0x11c   : > { %3028 = vmatmul.mubr.msk.f32.gmra.mxu1 %vm373_vm0, %v2601_v24 }
 0x11d   : > { %3030 = vmatprep.mubr.msk.f32.mxu1 %vm373_vm0, %v2602_v27 }
 0x11e   : > { %2968 = vmatpush3.xpose.msk.msra.mxu0 %vm583_vm1, %v3579_v51 }
 0x11f   : > { %2969 = vmatprep.subr.msk.mxu0 %vm583_vm1, %v3577_v50 }
 0x120   : > { %3031 = vmatmul.mubr.msk.f32.gmra.mxu1 %vm373_vm0, %v2603_v25 }
 0x122   : > { %2970 = vmatpush3.xpose.msk.msra.mxu0 %vm583_vm1, %v3577_v50 }
 0x123   : > { %2971 = vmatprep.subr.msk.mxu0 %vm583_vm1, %v3569_v45 }
 0x126   : > { %2972 = vmatpush3.xpose.msk.msra.mxu0 %vm583_vm1, %v3569_v45 }
 0x127   : > { %2973 = vmatprep.subr.msk.mxu0 %vm583_vm1, %v3567_v44 }
 0x12a   : > { %2974 = vmatpush3.xpose.msk.msra.mxu0 %vm583_vm1, %v3567_v44 }
 0x12b   : > { %2975 = vmatprep.subr.msk.mxu0 %vm583_vm1, %v3558_v39 }
 0x12e   : > { %2976 = vmatpush3.xpose.msk.msra.mxu0 %vm583_vm1, %v3558_v39 }
 0x12f   : > { %2977 = vmatprep.subr.msk.mxu0 %vm583_vm1, %v3555_v38 }
 0x132   : > { %2978 = vmatpush3.xpose.msk.msra.mxu0 %vm583_vm1, %v3555_v38 }
 0x133   : > { %2979 = vmatprep.subr.msk.mxu0 %vm583_vm1, %v3547_v33 }
 0x136   : > { %2980 = vmatpush3.xpose.msk.msra.mxu0 %vm583_vm1, %v3547_v33 }
 0x137   : > { %2981 = vmatprep.subr.msk.mxu0 %vm583_vm1, %v3545_v32 }
 0x13a   : > { %2982 = vmatpush3.xpose.msk.msra.mxu0 %vm583_vm1, %v3545_v32 }
 0x1a4   : > { %v2929_v28 = vpop.f32.mrf.mxu1 }
 0x1a6   : > { %v698_v29 = vpop.f32.mrf.mxu1 }
 0x1a7   : > { %2983 = vmatprep.mubr.msk.f32.mxu0 %vm583_vm1, %v698_v29  ;;  %v283_v29 = vlaneseq }
 0x1a8   : > { %v2932_v30 = vpop.f32.mrf.mxu1  ;;  %2984 = vmatmul.mubr.msk.f32.vlgmr.msra.gmra.mxu0 %vm583_vm1, %v2929_v28 }
 0x1aa   : > { %v708_v31 = vpop.f32.mrf.mxu1 }
 0x1ab   : > { %2986 = vmatprep.mubr.msk.f32.mxu0 %vm583_vm1, %v708_v31 }
 0x1ac   : > { %v2935_v34 = vpop.f32.mrf.mxu1  ;;  %2987 = vmatmul.mubr.msk.f32.gmra.mxu0 %vm583_vm1, %v2932_v30  ;;  %v3931_v30 = vshrl.u32 %v283_v29, 7 }
 0x1ae   : > { %v718_v33 = vpop.f32.mrf.mxu1  ;;  %v3934_v31 = vadd.s32 8, %v3931_v30 }
 0x1af   : > { %2989 = vmatprep.mubr.msk.f32.mxu0 %vm583_vm1, %v718_v33  ;;  %v3938_v33 = vstv %s271_s29  ;;  %s3250_s29 = scalar_lea.vmem %s3249_s22, 8192 }
 0x1b0   : > { %v2938_v35 = vpop.f32.mrf.mxu1  ;;  %2990 = vmatmul.mubr.msk.f32.gmra.mxu0 %vm583_vm1, %v2935_v34  ;;  %v3936_v34 = vand.u32 127, %v283_v29  ;;  %p3252_p1 = scmp.lt.s32.totalorder %s3250_s29, %s3244_s19 }
 0x1b2   : > { %v728_v32 = vpop.f32.mrf.mxu1  ;;  %vm336_vm2 = vcmp.eq.s32.totalorder %v3934_v31, %v3936_v34  ;;  %vm318_vm3 = vcmp.lt.s32.totalorder %v3936_v34, 16  ;;  %vm335_vm4 = vcmp.eq.s32.totalorder %v3931_v30, %v3936_v34  ;;  %p3253_p2 = por %p3252_p1, %p3251_p0 }
 0x1b3   : > { %2992 = vmatprep.mubr.msk.f32.mxu0 %vm583_vm1, %v728_v32 }
 0x1b4   : > { %v2941_v36 = vpop.f32.mrf.mxu1  ;;  %2993 = vmatmul.mubr.msk.f32.gmra.mxu0 %vm583_vm1, %v2938_v35  ;;  %p3254_p3 = pnand %p3253_p2, %p3247_p13 }
 0x1b6   : > { %v738_v37 = vpop.f32.mrf.mxu1 }
 0x1b7   : > { %2995 = vmatprep.mubr.msk.f32.mxu0 %vm583_vm1, %v738_v37 }
 0x1b8   : > { %v2944_v38 = vpop.f32.mrf.mxu1  ;;  %2996 = vmatmul.mubr.msk.f32.gmra.mxu0 %vm583_vm1, %v2941_v36 }
 0x1ba   : > { %v748_v39 = vpop.f32.mrf.mxu1 }
 0x1bb   : > { %2998 = vmatprep.mubr.msk.f32.mxu0 %vm583_vm1, %v748_v39 }
 0x1bc   : > { %v2947_v40 = vpop.f32.mrf.mxu1  ;;  %2999 = vmatmul.mubr.msk.f32.gmra.mxu0 %vm583_vm1, %v2944_v38 }
 0x1be   : > { %v758_v41 = vpop.f32.mrf.mxu1 }
 0x1bf   : > { %3001 = vmatprep.mubr.msk.f32.mxu0 %vm583_vm1, %v758_v41 }
 0x1c0   : > { %v2950_v42 = vpop.f32.mrf.mxu1  ;;  %3002 = vmatmul.mubr.msk.f32.gmra.mxu0 %vm583_vm1, %v2947_v40 }
 0x1c2   : > { %v768_v43 = vpop.f32.mrf.mxu1 }
 0x1c3   : > { %3004 = vmatprep.mubr.msk.f32.mxu0 %vm583_vm1, %v768_v43 }
 0x1c4   : > { %3005 = vmatmul.mubr.msk.f32.gmra.mxu0 %vm583_vm1, %v2950_v42  ;;  %v3011_v44 = vpop.f32.mrf.mxu1 }
 0x1c5   : > { %v1507_v45 = vadd.f32 %v3011_v44, %v3541_v26 }
 0x1c6   : > { %v1501_v46 = vpop.f32.mrf.mxu1 }
 0x1c7   : > { %v1502_v47 = vadd.f32 %v3541_v26, %v1501_v46  ;;  %v3728_v50 = vmax.f32 %v1507_v45, 0.0 }
 0x1c8   : > { %v3014_v48 = vpop.f32.mrf.mxu1 }
 0x1c9   : > { %v3726_v49 = vmax.f32 %v1502_v47, 0.0  ;;  %v1517_v51 = vadd.f32 %v3014_v48, %v3541_v26 }
 0x1ca   : > { %v1511_v52 = vpop.f32.mrf.mxu1 }
 0x1cb   : > { %v1512_v53 = vadd.f32 %v3541_v26, %v1511_v52  ;;  %3051 = vmatprep.mubr.msk.f32.mxu1 %vm583_vm1, %v3726_v49  ;;  %v3738_v56 = vmax.f32 %v1517_v51, 0.0 }
 0x1cc   : > { %v3017_v54 = vpop.f32.mrf.mxu1  ;;  %3052 = vmatmul.mubr.msk.f32.vlgmr.msra.gmra.mxu1 %vm583_vm1, %v3728_v50 }
 0x1cd   : > { %v3736_v55 = vmax.f32 %v1512_v53, 0.0  ;;  %v1527_v57 = vadd.f32 %v3017_v54, %v3541_v26 }
 0x1ce   : > { %v1521_v58 = vpop.f32.mrf.mxu1 }
 0x1cf   : > { %v1522_v59 = vadd.f32 %v3541_v26, %v1521_v58  ;;  %3054 = vmatprep.mubr.msk.f32.mxu1 %vm583_vm1, %v3736_v55  ;;  %v3748_v62 = vmax.f32 %v1527_v57, 0.0 }
 0x1d0   : > { %v3020_v60 = vpop.f32.mrf.mxu1  ;;  %3055 = vmatmul.mubr.msk.f32.gmra.mxu1 %vm583_vm1, %v3738_v56 }
 0x1d1   : > { %v3746_v61 = vmax.f32 %v1522_v59, 0.0  ;;  %v1537_v63 = vadd.f32 %v3020_v60, %v3541_v26 }
 0x1d2   : > { %v1531_v0 = vpop.f32.mrf.mxu1 }
 0x1d3   : > { %v1532_v6 = vadd.f32 %v3541_v26, %v1531_v0  ;;  %3057 = vmatprep.mubr.msk.f32.mxu1 %vm583_vm1, %v3746_v61  ;;  %v3758_v10 = vmax.f32 %v1537_v63, 0.0 }
 0x1d4   : > { %v3023_v7 = vpop.f32.mrf.mxu1  ;;  %3058 = vmatmul.mubr.msk.f32.gmra.mxu1 %vm583_vm1, %v3748_v62 }
 0x1d5   : > { %v3756_v8 = vmax.f32 %v1532_v6, 0.0  ;;  %v1547_v11 = vadd.f32 %v3023_v7, %v3541_v26 }
 0x1d6   : > { %v1541_v12 = vpop.f32.mrf.mxu1 }
 0x1d7   : > { %v1542_v13 = vadd.f32 %v3541_v26, %v1541_v12  ;;  %3060 = vmatprep.mubr.msk.f32.mxu1 %vm583_vm1, %v3756_v8  ;;  %v3768_v16 = vmax.f32 %v1547_v11, 0.0 }
 0x1d8   : > { %v3026_v14 = vpop.f32.mrf.mxu1  ;;  %3061 = vmatmul.mubr.msk.f32.gmra.mxu1 %vm583_vm1, %v3758_v10 }
 0x1d9   : > { %v3766_v15 = vmax.f32 %v1542_v13, 0.0  ;;  %v1557_v17 = vadd.f32 %v3026_v14, %v3541_v26 }
 0x1da   : > { %v1551_v18 = vpop.f32.mrf.mxu1 }
 0x1db   : > { %v1552_v19 = vadd.f32 %v3541_v26, %v1551_v18  ;;  %3063 = vmatprep.mubr.msk.f32.mxu1 %vm583_vm1, %v3766_v15  ;;  %v1591_v22 = vmax.f32 %v1557_v17, 0.0 }
 0x1dc   : > { %v3029_v20 = vpop.f32.mrf.mxu1  ;;  %3064 = vmatmul.mubr.msk.f32.gmra.mxu1 %vm583_vm1, %v3768_v16 }
 0x1dd   : > { %v3776_v21 = vmax.f32 %v1552_v19, 0.0  ;;  %v1567_v1 = vadd.f32 %v3029_v20, %v3541_v26 }
 0x1de   : > { %v1561_v2 = vpop.f32.mrf.mxu1 }
 0x1df   : > { %v1562_v3 = vadd.f32 %v3541_v26, %v1561_v2  ;;  %3066 = vmatprep.mubr.msk.f32.mxu1 %vm583_vm1, %v3776_v21  ;;  %v1593_v23 = vmax.f32 %v1567_v1, 0.0 }
 0x1e0   : > { %v3032_v4 = vpop.f32.mrf.mxu1  ;;  %3067 = vmatmul.mubr.msk.f32.gmra.mxu1 %vm583_vm1, %v1591_v22 }
 0x1e1   : > { %v1592_v5 = vmax.f32 %v1562_v3, 0.0  ;;  %v1577_v9 = vadd.f32 %v3032_v4, %v3541_v26 }
 0x1e2   : > { %v1571_v24 = vpop.f32.mrf.mxu1 }
 0x1e3   : > { %v1595_v27 = vmax.f32 %v1577_v9, 0.0  ;;  %v1572_v25 = vadd.f32 %v3541_v26, %v1571_v24  ;;  %3069 = vmatprep.mubr.msk.f32.mxu1 %vm583_vm1, %v1592_v5  ;;  %v3336_v26 = vmov 0.0  }
 0x1e4   : > { %3070 = vmatmul.mubr.msk.f32.gmra.mxu1 %vm583_vm1, %v1593_v23  ;;  %1320 = vst [vmem:[%s3813_s27 + $0x10] sm:$0xff] %v3336_v26  ;;  %1321 = vst [vmem:[%s3813_s27 + $0x18] sm:$0xff] %v3336_v26 }
 0x1e5   : > { %v1594_v28 = vmax.f32 %v1572_v25, 0.0  ;;  %3075 = vmatprep.subr.msk.mxu0 %vm583_vm1, %v1595_v27  ;;  %3131 = vmatprep.subr.msk.mxu1 %vm583_vm1, %v1595_v27  ;;  %1322 = vst [vmem:[%s3813_s27 + $0x20] sm:$0xff] %v3336_v26  ;;  %1323 = vst [vmem:[%s3813_s27 + $0x28] sm:$0xff] %v3336_v26 }
 0x1e6   : > { %3076 = vmatpush3.xpose.msk.msra.mxu0 %vm583_vm1, %v1595_v27  ;;  %3147 = vmatpush3.xpose.msk.msra.mxu1 %vm583_vm1, %v1595_v27  ;;  %1324 = vst [vmem:[%s3813_s27 + $0x30] sm:$0xff] %v3336_v26  ;;  %1325 = vst [vmem:[%s3813_s27 + $0x38] sm:$0xff] %v3336_v26 }
 0x1e7   : > { %3077 = vmatprep.subr.msk.mxu0 %vm583_vm1, %v1594_v28  ;;  %3132 = vmatprep.subr.msk.mxu1 %vm583_vm1, %v1594_v28  ;;  %1326 = vst [vmem:[%s3813_s27 + $0x40] sm:$0xff] %v3336_v26  ;;  %1327 = vst [vmem:[%s3813_s27 + $0x48] sm:$0xff] %v3336_v26 }
 0x1e8   : > { %3072 = vmatprep.mubr.msk.f32.mxu1 %vm583_vm1, %v1594_v28  ;;  %1328 = vst [vmem:[%s3813_s27 + $0x50] sm:$0xff] %v3336_v26  ;;  %1329 = vst [vmem:[%s3813_s27 + $0x58] sm:$0xff] %v3336_v26 }
 0x1e9   : > { %3073 = vmatmul.mubr.msk.f32.gmra.mxu1 %vm583_vm1, %v1595_v27  ;;  %1330 = vst [vmem:[%s3813_s27 + $0x60] sm:$0xff] %v3336_v26  ;;  %1331 = vst [vmem:[%s3813_s27 + $0x68] sm:$0xff] %v3336_v26 }
 0x1ea   : > { %3078 = vmatpush3.xpose.msk.msra.mxu0 %vm583_vm1, %v1594_v28  ;;  %3148 = vmatpush3.xpose.msk.msra.mxu1 %vm583_vm1, %v1594_v28  ;;  %1332 = vst [vmem:[%s3813_s27 + $0x70] sm:$0xff] %v3336_v26  ;;  %1333 = vst [vmem:[%s3813_s27 + $0x78] sm:$0xff] %v3336_v26 }
 0x1eb   : > { %3079 = vmatprep.subr.msk.mxu0 %vm583_vm1, %v1593_v23  ;;  %3133 = vmatprep.subr.msk.mxu1 %vm583_vm1, %v1593_v23  ;;  %2702 = vst [vmem:[%s3813_s27 + $0x90] sm:$0xff] %v3336_v26  ;;  %2703 = vst [vmem:[%s3813_s27 + $0x98] sm:$0xff] %v3336_v26 }
 0x1ec   : > { %2704 = vst [vmem:[%s3813_s27 + $0xa0] sm:$0xff] %v3336_v26  ;;  %2705 = vst [vmem:[%s3813_s27 + $0xa8] sm:$0xff] %v3336_v26 }
 0x1ed   : > { %2706 = vst [vmem:[%s3813_s27 + $0xb0] sm:$0xff] %v3336_v26  ;;  %2707 = vst [vmem:[%s3813_s27 + $0xb8] sm:$0xff] %v3336_v26 }
 0x1ee   : > { %3080 = vmatpush3.xpose.msk.msra.mxu0 %vm583_vm1, %v1593_v23  ;;  %3149 = vmatpush3.xpose.msk.msra.mxu1 %vm583_vm1, %v1593_v23  ;;  %2708 = vst [vmem:[%s3813_s27 + $0xc0] sm:$0xff] %v3336_v26  ;;  %2709 = vst [vmem:[%s3813_s27 + $0xc8] sm:$0xff] %v3336_v26 }
 0x1ef   : > { %3081 = vmatprep.subr.msk.mxu0 %vm583_vm1, %v1592_v5  ;;  %3134 = vmatprep.subr.msk.mxu1 %vm583_vm1, %v1592_v5  ;;  %2710 = vst [vmem:[%s3813_s27 + $0xd0] sm:$0xff] %v3336_v26  ;;  %2711 = vst [vmem:[%s3813_s27 + $0xd8] sm:$0xff] %v3336_v26 }
 0x1f0   : > { %2712 = vst [vmem:[%s3813_s27 + $0xe0] sm:$0xff] %v3336_v26  ;;  %2713 = vst [vmem:[%s3813_s27 + $0xe8] sm:$0xff] %v3336_v26 }
 0x1f1   : > { %2714 = vst [vmem:[%s3813_s27 + $0xf0] sm:$0xff] %v3336_v26  ;;  %2715 = vst [vmem:[%s3813_s27 + $0xf8] sm:$0xff] %v3336_v26 }
 0x1f2   : > { %3082 = vmatpush3.xpose.msk.msra.mxu0 %vm583_vm1, %v1592_v5  ;;  %3150 = vmatpush3.xpose.msk.msra.mxu1 %vm583_vm1, %v1592_v5 }
 0x1f3   : > { %3083 = vmatprep.subr.msk.mxu0 %vm583_vm1, %v1591_v22  ;;  %3135 = vmatprep.subr.msk.mxu1 %vm583_vm1, %v1591_v22 }
 0x1f6   : > { %3084 = vmatpush3.xpose.msk.msra.mxu0 %vm583_vm1, %v1591_v22  ;;  %3151 = vmatpush3.xpose.msk.msra.mxu1 %vm583_vm1, %v1591_v22 }
 0x1f7   : > { %3085 = vmatprep.subr.msk.mxu0 %vm583_vm1, %v3776_v21  ;;  %3136 = vmatprep.subr.msk.mxu1 %vm583_vm1, %v3776_v21 }
 0x1fa   : > { %3086 = vmatpush3.xpose.msk.msra.mxu0 %vm583_vm1, %v3776_v21  ;;  %3152 = vmatpush3.xpose.msk.msra.mxu1 %vm583_vm1, %v3776_v21 }
 0x1fb   : > { %3087 = vmatprep.subr.msk.mxu0 %vm583_vm1, %v3768_v16  ;;  %3137 = vmatprep.subr.msk.mxu1 %vm583_vm1, %v3768_v16 }
 0x1fe   : > { %3088 = vmatpush3.xpose.msk.msra.mxu0 %vm583_vm1, %v3768_v16  ;;  %3153 = vmatpush3.xpose.msk.msra.mxu1 %vm583_vm1, %v3768_v16 }
 0x1ff   : > { %3089 = vmatprep.subr.msk.mxu0 %vm583_vm1, %v3766_v15  ;;  %3138 = vmatprep.subr.msk.mxu1 %vm583_vm1, %v3766_v15 }
 0x202   : > { %3090 = vmatpush3.xpose.msk.msra.mxu0 %vm583_vm1, %v3766_v15  ;;  %3154 = vmatpush3.xpose.msk.msra.mxu1 %vm583_vm1, %v3766_v15 }
 0x203   : > { %3091 = vmatprep.subr.msk.mxu0 %vm583_vm1, %v3758_v10  ;;  %3139 = vmatprep.subr.msk.mxu1 %vm583_vm1, %v3758_v10 }
 0x206   : > { %3092 = vmatpush3.xpose.msk.msra.mxu0 %vm583_vm1, %v3758_v10  ;;  %3155 = vmatpush3.xpose.msk.msra.mxu1 %vm583_vm1, %v3758_v10 }
 0x207   : > { %3093 = vmatprep.subr.msk.mxu0 %vm583_vm1, %v3756_v8  ;;  %3140 = vmatprep.subr.msk.mxu1 %vm583_vm1, %v3756_v8 }
 0x20a   : > { %3094 = vmatpush3.xpose.msk.msra.mxu0 %vm583_vm1, %v3756_v8  ;;  %3156 = vmatpush3.xpose.msk.msra.mxu1 %vm583_vm1, %v3756_v8 }
 0x20b   : > { %3095 = vmatprep.subr.msk.mxu0 %vm583_vm1, %v3748_v62  ;;  %3141 = vmatprep.subr.msk.mxu1 %vm583_vm1, %v3748_v62 }
 0x20e   : > { %3096 = vmatpush3.xpose.msk.msra.mxu0 %vm583_vm1, %v3748_v62  ;;  %3157 = vmatpush3.xpose.msk.msra.mxu1 %vm583_vm1, %v3748_v62 }
 0x20f   : > { %3097 = vmatprep.subr.msk.mxu0 %vm583_vm1, %v3746_v61  ;;  %3142 = vmatprep.subr.msk.mxu1 %vm583_vm1, %v3746_v61 }
 0x212   : > { %3098 = vmatpush3.xpose.msk.msra.mxu0 %vm583_vm1, %v3746_v61  ;;  %3158 = vmatpush3.xpose.msk.msra.mxu1 %vm583_vm1, %v3746_v61 }
 0x213   : > { %3099 = vmatprep.subr.msk.mxu0 %vm583_vm1, %v3738_v56  ;;  %3143 = vmatprep.subr.msk.mxu1 %vm583_vm1, %v3738_v56 }
 0x216   : > { %3100 = vmatpush3.xpose.msk.msra.mxu0 %vm583_vm1, %v3738_v56  ;;  %3159 = vmatpush3.xpose.msk.msra.mxu1 %vm583_vm1, %v3738_v56 }
 0x217   : > { %3101 = vmatprep.subr.msk.mxu0 %vm583_vm1, %v3736_v55  ;;  %3144 = vmatprep.subr.msk.mxu1 %vm583_vm1, %v3736_v55 }
 0x21a   : > { %3102 = vmatpush3.xpose.msk.msra.mxu0 %vm583_vm1, %v3736_v55  ;;  %3160 = vmatpush3.xpose.msk.msra.mxu1 %vm583_vm1, %v3736_v55 }
 0x21b   : > { %3103 = vmatprep.subr.msk.mxu0 %vm583_vm1, %v3728_v50  ;;  %3145 = vmatprep.subr.msk.mxu1 %vm583_vm1, %v3728_v50 }
 0x21e   : > { %3104 = vmatpush3.xpose.msk.msra.mxu0 %vm583_vm1, %v3728_v50  ;;  %3161 = vmatpush3.xpose.msk.msra.mxu1 %vm583_vm1, %v3728_v50 }
 0x21f   : > { %3105 = vmatprep.subr.msk.mxu0 %vm583_vm1, %v3726_v49  ;;  %3146 = vmatprep.subr.msk.mxu1 %vm583_vm1, %v3726_v49 }
 0x222   : > { %3106 = vmatpush3.xpose.msk.msra.mxu0 %vm583_vm1, %v3726_v49  ;;  %3162 = vmatpush3.xpose.msk.msra.mxu1 %vm583_vm1, %v3726_v49 }
 0x268   : > { %v2985_v35 = vpop.f32.mrf.mxu0 }
 0x269   : > { %v898_v32 = vadd.f32 %v2985_v35, %v3938_v33 }
 0x26a   : > { %v892_v36 = vpop.f32.mrf.mxu0 }
 0x26b   : > { %v972_v37 = vsel %vm336_vm2, 0.0, %v898_v32  ;;  %v893_v38 = vadd.f32 %v892_v36, %v3938_v33 }
 0x26c   : > { %v2988_v39 = vpop.f32.mrf.mxu0  ;;  %v3952_v40 = vsel %vm318_vm3, %v972_v37, -1e+30 }
 0x26d   : > { %v971_v41 = vsel %vm335_vm4, 0.0, %v893_v38  ;;  %v1004_v42 = vmax.f32 %v3952_v40, -1e+30 }
 0x26e   : > { %v902_v43 = vpop.f32.mrf.mxu0  ;;  %v3960_v44 = vsel %vm318_vm3, %v971_v41, -1e+30 }
 0x26f   : > { %1126 = vmax.xlane.f32.xlu0 %v3960_v44  ;;  %v1003_v45 = vmax.f32 %v3960_v44, -1e+30  ;;  %v1008_v46 = vmax.f32 %v1004_v42, -1e+30 }
 0x270   : > { %v2991_v47 = vpop.f32.mrf.mxu0 }
 0x271   : > { %v1007_v48 = vmax.f32 %v1003_v45, -1e+30  ;;  %v1012_v51 = vmax.f32 %v1008_v46, -1e+30 }
 0x272   : > { %v912_v49 = vpop.f32.mrf.mxu0 }
 0x273   : > { %v1011_v50 = vmax.f32 %v1007_v48, -1e+30  ;;  %1128 = vmax.xlane.f32.xlu0 %v3952_v40 }
 0x274   : > { %v2994_v52 = vpop.f32.mrf.mxu0 }
 0x275   : > { %v1015_v53 = vmax.f32 %v1011_v50, %v1012_v51 }
 0x276   : > { %v922_v54 = vpop.f32.mrf.mxu0 }
 0x277   : > { %v1017_v55 = vmax.f32 %v1015_v53, -1e+30 }
 0x278   : > { %v2997_v56 = vpop.f32.mrf.mxu0 }
 0x279   : > { %v1018_v57 = vrot.slane %v1017_v55, 4 }
 0x27a   : > { %v932_v58 = vpop.f32.mrf.mxu0 }
 0x27b   : > { %v1019_v59 = vmax.f32 %v1017_v55, %v1018_v57 }
 0x27c   : > { %v3000_v60 = vpop.f32.mrf.mxu0 }
 0x27d   : > { %v1020_v61 = vrot.slane %v1019_v59, 2 }
 0x27e   : > { %v942_v62 = vpop.f32.mrf.mxu0 }
 0x27f   : > { %v1021_v63 = vmax.f32 %v1019_v59, %v1020_v61 }
 0x280   : > { %v3003_v0 = vpop.f32.mrf.mxu0 }
 0x281   : > { %v1022_v6 = vrot.slane %v1021_v63, 1 }
 0x282   : > { %v952_v7 = vpop.f32.mrf.mxu0 }
 0x283   : > { %v1023_v8 = vmax.f32 %v1021_v63, %v1022_v6 }
 0x284   : > { %v3006_v10 = vpop.f32.mrf.mxu0 }
 0x285   : > { %v1024_v11 = vsub.f32 %v3960_v44, %v1023_v8  ;;  %v1025_v12 = vsub.f32 %v3952_v40, %v1023_v8  ;;  %v1026_v13 = vsub.f32 -1e+30, %v1023_v8 }
 0x286   : > { %v962_v14 = vpop.f32.mrf.mxu0 }
 0x287   : > { %v1040_v15 = vmul.f32 1.442695, %v1024_v11  ;;  %v1042_v16 = vmul.f32 1.442695, %v1025_v12  ;;  %v1044_v17 = vmul.f32 1.442695, %v1026_v13 }
 0x289   : > { %3212 = vpow2.f32 %v1040_v15 }
 0x28a   : > { %3214 = vpow2.f32 %v1042_v16 }
 0x28b   : > { %3216 = vpow2.f32 %v1044_v17 }
 0x28c   : > { %v3053_v18 = vpop.f32.mrf.mxu1 }
 0x28e   : > { %v1710_v19 = vpop.f32.mrf.mxu1 }
 0x28f   : > { %3107 = vmatprep.mubr.msk.f32.mxu0 %vm583_vm1, %v1710_v19 }
 0x290   : > { %3108 = vmatmul.mubr.msk.f32.vlgmr.msra.gmra.mxu0 %vm583_vm1, %v3053_v18  ;;  %v3056_v20 = vpop.f32.mrf.mxu1 }
 0x292   : > { %v1720_v21 = vpop.f32.mrf.mxu1 }
 0x293   : > { %3110 = vmatprep.mubr.msk.f32.mxu0 %vm583_vm1, %v1720_v21 }
 0x294   : > { %v3059_v22 = vpop.f32.mrf.mxu1  ;;  %3111 = vmatmul.mubr.msk.f32.gmra.mxu0 %vm583_vm1, %v3056_v20 }
 0x296   : > { %v3213_v1 = vpop.eup %3212  ;;  %v1730_v2 = vpop.f32.mrf.mxu1 }
 0x297   : > { %v3215_v3 = vpop.eup %3214  ;;  %3113 = vmatprep.mubr.msk.f32.mxu0 %vm583_vm1, %v1730_v2 }
 0x298   : > { %v1072_v4 = vadd.f32 %v3215_v3, %v3213_v1  ;;  %v3062_v5 = vpop.f32.mrf.mxu1  ;;  %3114 = vmatmul.mubr.msk.f32.gmra.mxu0 %vm583_vm1, %v3059_v22  ;;  %v3217_v9 = vpop.eup %3216 }
 0x29a   : > { %v1073_v23 = vadd.f32 %v3217_v9, %v1072_v4  ;;  %v1740_v24 = vpop.f32.mrf.mxu1 }
 0x29b   : > { %3116 = vmatprep.mubr.msk.f32.mxu0 %vm583_vm1, %v1740_v24 }
 0x29c   : > { %v1074_v27 = vadd.f32 %v3217_v9, %v1073_v23  ;;  %v3065_v25 = vpop.f32.mrf.mxu1  ;;  %3117 = vmatmul.mubr.msk.f32.gmra.mxu0 %vm583_vm1, %v3062_v5 }
 0x29e   : > { %v1075_v28 = vadd.f32 %v3217_v9, %v1074_v27  ;;  %v1750_v26 = vpop.f32.mrf.mxu1 }
 0x29f   : > { %3119 = vmatprep.mubr.msk.f32.mxu0 %vm583_vm1, %v1750_v26 }
 0x2a0   : > { %v1076_v29 = vadd.f32 %v3217_v9, %v1075_v28  ;;  %v3068_v35 = vpop.f32.mrf.mxu1  ;;  %3120 = vmatmul.mubr.msk.f32.gmra.mxu0 %vm583_vm1, %v3065_v25 }
 0x2a2   : > { %v1077_v32 = vadd.f32 %v3217_v9, %v1076_v29  ;;  %v1760_v36 = vpop.f32.mrf.mxu1 }
 0x2a3   : > { %3122 = vmatprep.mubr.msk.f32.mxu0 %vm583_vm1, %v1760_v36 }
 0x2a4   : > { %v1078_v37 = vadd.f32 %v3217_v9, %v1077_v32  ;;  %v3071_v38 = vpop.f32.mrf.mxu1  ;;  %3123 = vmatmul.mubr.msk.f32.gmra.mxu0 %vm583_vm1, %v3068_v35 }
 0x2a6   : > { %v1079_v39 = vadd.f32 %v3217_v9, %v1078_v37  ;;  %v1770_v41 = vpop.f32.mrf.mxu1 }
 0x2a7   : > { %3125 = vmatprep.mubr.msk.f32.mxu1 %vm583_vm1, %v1770_v41 }
 0x2a8   : > { %v1080_v42 = vadd.f32 %v3217_v9, %v1079_v39  ;;  %3126 = vmatmul.mubr.msk.f32.vlgmr.msra.gmra.mxu1 %vm583_vm1, %v3071_v38 }
 0x2a9   : > { %v3074_v43 = vpop.f32.mrf.mxu1 }
 0x2aa   : > { %v1081_v45 = vadd.f32 %v3217_v9, %v1080_v42 }
 0x2ab   : > { %v1780_v46 = vpop.f32.mrf.mxu1 }
 0x2ac   : > { %v1082_v47 = vadd.f32 %v3217_v9, %v1081_v45  ;;  %3128 = vmatprep.mubr.msk.f32.mxu1 %vm583_vm1, %v1780_v46 }
 0x2ad   : > { %3129 = vmatmul.mubr.msk.f32.gmra.mxu1 %vm583_vm1, %v3074_v43 }
 0x2ae   : > { %v1083_v48 = vadd.f32 %v3217_v9, %v1082_v47 }
 0x2b0   : > { %v1084_v49 = vadd.f32 %v3217_v9, %v1083_v48  ;;  %v3338_v48 = vmov 0  }
 0x2b2   : > { %v1085_v50 = vadd.f32 %v3217_v9, %v1084_v49  ;;  %v1363_v49 = vsel %vm1355_vm7, 16843009, %v3338_v48 }
 0x2b3   : > { %1367 = vst [vmem:[%s4023_s10 + $0x8] sm:$0xff] %v1363_v49  ;;  %1368 = vst [vmem:[%s4023_s10 + $0x10] sm:$0xff] %v1363_v49 }
 0x2b4   : > { %v1086_v51 = vadd.f32 %v3217_v9, %v1085_v50  ;;  %1369 = vst [vmem:[%s4023_s10 + $0x18] sm:$0xff] %v1363_v49  ;;  %2717 = vst [vmem:[%s4023_s10 + $0x28] sm:$0xff] %v1363_v49 }
 0x2b5   : > { %2718 = vst [vmem:[%s4023_s10 + $0x30] sm:$0xff] %v1363_v49  ;;  %2719 = vst [vmem:[%s4023_s10 + $0x38] sm:$0xff] %v1363_v49 }
 0x2b6   : > { %v1087_v52 = vrot.slane %v1086_v51, 4 }
 0x2b8   : > { %v1088_v53 = vadd.f32 %v1087_v52, %v1086_v51 }
 0x2ba   : > { %v1089_v54 = vrot.slane %v1088_v53, 2 }
 0x2bc   : > { %v1090_v55 = vadd.f32 %v1089_v54, %v1088_v53 }
 0x2be   : > { %v1091_v56 = vrot.slane %v1090_v55, 1 }
 0x2c0   : > { %v1092_v57 = vadd.f32 %v1091_v56, %v1090_v55 }
 0x2c2   : > { %3218 = vrcp.f32 %v1092_v57 }
 0x2cf   : > { %v3219_v58 = vpop.eup %3218 }
 0x2d0   : > { %v3983_v59 = vmul.f32 %v3219_v58, %v3215_v3  ;;  %v1094_v63 = vmul.f32 %v3219_v58, %v3213_v1 }
 0x2f8   : > { %v1127_v60 = vpop.xlane.xlu0 %1126 }
 0x2f9   : > { %v1158_v61 = vsub.f32 %v3960_v44, %v1127_v60 }
 0x2fb   : > { %v1174_v62 = vmul.f32 1.442695, %v1158_v61 }
 0x2fc   : > { %v1129_v7 = vpop.xlane.xlu0 %1128 }
 0x2fd   : > { %3220 = vpow2.f32 %v1174_v62  ;;  %v1159_v8 = vsub.f32 %v3952_v40, %v1129_v7 }
 0x2ff   : > { %v1176_v10 = vmul.f32 1.442695, %v1159_v8 }
 0x301   : > { %3222 = vpow2.f32 %v1176_v10 }
 0x30a   : > { %v3221_v0 = vpop.eup %3220 }
 0x30b   : > { %v3986_v6 = vmul.f32 %v3221_v0, %v1094_v63  ;;  %1238 = vadd.xlane.f32.xlu0 %v3221_v0 }
 0x30e   : > { %v4009_v4 = vpop.eup %3222 }
 0x350   : > { %v3109_v11 = vpop.f32.mrf.mxu0 }
 0x351   : > { %v1909_v12 = vadd.f32 %v3109_v11, %v3938_v33 }
 0x352   : > { %v1903_v13 = vpop.f32.mrf.mxu0 }
 0x353   : > { %v1983_v44 = vsel %vm336_vm2, 0.0, %v1909_v12  ;;  %v1904_v14 = vadd.f32 %v1903_v13, %v3938_v33 }
 0x354   : > { %v3996_v15 = vsel %vm318_vm3, %v1983_v44, -1e+30  ;;  %v3112_v16 = vpop.f32.mrf.mxu0 }
 0x355   : > { %v1982_v40 = vsel %vm335_vm4, 0.0, %v1904_v14  ;;  %v2015_v17 = vmax.f32 %v3996_v15, -1e+30 }
 0x356   : > { %v4004_v18 = vsel %vm318_vm3, %v1982_v40, -1e+30  ;;  %v1913_v19 = vpop.f32.mrf.mxu0 }
 0x357   : > { %2138 = vmax.xlane.f32.xlu1 %v4004_v18  ;;  %v2014_v31 = vmax.f32 %v4004_v18, -1e+30  ;;  %v2019_v33 = vmax.f32 %v2015_v17, -1e+30 }
 0x358   : > { %v3115_v20 = vpop.f32.mrf.mxu0 }
 0x359   : > { %v2018_v21 = vmax.f32 %v2014_v31, -1e+30  ;;  %v2023_v2 = vmax.f32 %v2019_v33, -1e+30 }
 0x35a   : > { %v1923_v22 = vpop.f32.mrf.mxu0 }
 0x35b   : > { %v2022_v1 = vmax.f32 %v2018_v21, -1e+30  ;;  %2140 = vmax.xlane.f32.xlu1 %v3996_v15 }
 0x35c   : > { %v3118_v30 = vpop.f32.mrf.mxu0 }
 0x35d   : > { %v2026_v3 = vmax.f32 %v2022_v1, %v2023_v2 }
 0x35e   : > { %v1933_v5 = vpop.f32.mrf.mxu0 }
 0x35f   : > { %v2028_v9 = vmax.f32 %v2026_v3, -1e+30  ;;  %1240 = vadd.xlane.f32.xlu1 %v4009_v4 }
 0x360   : > { %v3121_v23 = vpop.f32.mrf.mxu0 }
 0x361   : > { %v2029_v24 = vrot.slane %v2028_v9, 4 }
 0x362   : > { %v1943_v27 = vpop.f32.mrf.mxu0 }
 0x363   : > { %v2030_v25 = vmax.f32 %v2028_v9, %v2029_v24 }
 0x364   : > { %v3124_v28 = vpop.f32.mrf.mxu0 }
 0x365   : > { %v2031_v26 = vrot.slane %v2030_v25, 2 }
 0x366   : > { %v1953_v29 = vpop.f32.mrf.mxu0 }
 0x367   : > { %v2032_v35 = vmax.f32 %v2030_v25, %v2031_v26 }
 0x368   : > { %v3127_v32 = vpop.f32.mrf.mxu1 }
 0x369   : > { %v2033_v37 = vrot.slane %v2032_v35, 1 }
 0x36a   : > { %v1963_v36 = vpop.f32.mrf.mxu1 }
 0x36b   : > { %v2034_v41 = vmax.f32 %v2032_v35, %v2033_v37 }
 0x36d   : > { %v3130_v38 = vpop.f32.mrf.mxu1  ;;  %v2035_v42 = vsub.f32 %v4004_v18, %v2034_v41  ;;  %v2036_v43 = vsub.f32 %v3996_v15, %v2034_v41  ;;  %v2037_v50 = vsub.f32 -1e+30, %v2034_v41 }
 0x36f   : > { %v1973_v39 = vpop.f32.mrf.mxu1  ;;  %v2051_v45 = vmul.f32 1.442695, %v2035_v42  ;;  %v2053_v47 = vmul.f32 1.442695, %v2036_v43  ;;  %v2055_v51 = vmul.f32 1.442695, %v2037_v50 }
 0x371   : > { %3224 = vpow2.f32 %v2051_v45 }
 0x372   : > { %3226 = vpow2.f32 %v2053_v47 }
 0x373   : > { %3228 = vpow2.f32 %v2055_v51 }
 0x37e   : > { %v3225_v52 = vpop.eup %3224 }
 0x37f   : > { %v3227_v53 = vpop.eup %3226 }
 0x380   : > { %v2083_v54 = vadd.f32 %v3227_v53, %v3225_v52  ;;  %v3229_v55 = vpop.eup %3228 }
 0x382   : > { %v2084_v56 = vadd.f32 %v3229_v55, %v2083_v54 }
 0x384   : > { %v2085_v58 = vadd.f32 %v3229_v55, %v2084_v56 }
 0x386   : > { %v2086_v60 = vadd.f32 %v3229_v55, %v2085_v58 }
 0x388   : > { %v2087_v61 = vadd.f32 %v3229_v55, %v2086_v60 }
 0x38a   : > { %v2088_v62 = vadd.f32 %v3229_v55, %v2087_v61 }
 0x38c   : > { %v2089_v7 = vadd.f32 %v3229_v55, %v2088_v62 }
 0x38e   : > { %v2090_v10 = vadd.f32 %v3229_v55, %v2089_v7 }
 0x390   : > { %v2091_v11 = vadd.f32 %v3229_v55, %v2090_v10 }
 0x392   : > { %v2092_v12 = vadd.f32 %v3229_v55, %v2091_v11 }
 0x394   : > { %v1239_v57 = vpop.xlane.xlu0 %1238  ;;  %v2093_v13 = vadd.f32 %v3229_v55, %v2092_v12 }
 0x395   : > { %3230 = vrcp.f32 %v1239_v57 }
 0x396   : > { %v2094_v44 = vadd.f32 %v3229_v55, %v2093_v13 }
 0x398   : > { %v2095_v14 = vadd.f32 %v3229_v55, %v2094_v44 }
 0x39a   : > { %v2096_v16 = vadd.f32 %v3229_v55, %v2095_v14 }
 0x39c   : > { %v2097_v40 = vadd.f32 %v3229_v55, %v2096_v16 }
 0x39e   : > { %v2098_v17 = vrot.slane %v2097_v40, 4 }
 0x3a0   : > { %v2099_v19 = vadd.f32 %v2098_v17, %v2097_v40 }
 0x3a2   : > { %v3231_v63 = vpop.eup %3230  ;;  %v2100_v31 = vrot.slane %v2099_v19, 2 }
 0x3a3   : > { %v1286_v0 = vmul.f32 %v3231_v63, %v3986_v6 }
 0x3a4   : > { %v2101_v33 = vadd.f32 %v2100_v31, %v2099_v19 }
 0x3a5   : > { %v1302_v8 = vsel %vm318_vm3, %v1286_v0, 0.0 }
 0x3a6   : > { %1318 = vst [vmem:[%s3813_s27] sm:$0xff] %v1302_v8  ;;  %v2102_v20 = vrot.slane %v2101_v33, 1  ;;  %vm1334_vm8 = vcmp.gt.f32.partialorder %v1302_v8, 0.02 }
 0x3a8   : > { %v2103_v21 = vadd.f32 %v2102_v20, %v2101_v33 }
 0x3aa   : > { %3232 = vrcp.f32 %v2103_v21 }
 0x3b7   : > { %v3233_v9 = vpop.eup %3232 }
 0x3b8   : > { %v2105_v23 = vmul.f32 %v3233_v9, %v3225_v52  ;;  %v2106_v25 = vmul.f32 %v3233_v9, %v3227_v53 }
 0x3e0   : > { %v2139_v6 = vpop.xlane.xlu1 %2138 }
 0x3e1   : > { %v2170_v22 = vsub.f32 %v4004_v18, %v2139_v6  ;;  %v1223_v18 = vmul.f32 %v4009_v4, %v3983_v59 }
 0x3e3   : > { %v2186_v1 = vmul.f32 1.442695, %v2170_v22 }
 0x3e4   : > { %v2141_v2 = vpop.xlane.xlu1 %2140 }
 0x3e5   : > { %3234 = vpow2.f32 %v2186_v1  ;;  %v2171_v30 = vsub.f32 %v3996_v15, %v2141_v2 }
 0x3e7   : > { %v2188_v3 = vmul.f32 1.442695, %v2171_v30 }
 0x3e8   : > { %v1241_v5 = vpop.xlane.xlu1 %1240 }
 0x3e9   : > { %3236 = vpow2.f32 %v2188_v3 }
 0x3ea   : > { %3238 = vrcp.f32 %v1241_v5 }
 0x3f2   : > { %v3235_v24 = vpop.eup %3234 }
 0x3f3   : > { %v2234_v27 = vmul.f32 %v3235_v24, %v2105_v23  ;;  %2250 = vadd.xlane.f32.xlu0 %v3235_v24 }
 0x3f6   : > { %v3237_v28 = vpop.eup %3236 }
 0x3f7   : > { %v3239_v26 = vpop.eup %3238  ;;  %v2235_v29 = vmul.f32 %v3237_v28, %v2106_v25  ;;  %2252 = vadd.xlane.f32.xlu1 %v3237_v28 }
 0x3f8   : > { %v1287_v15 = vmul.f32 %v3239_v26, %v1223_v18 }
 0x3fa   : > { %v1303_v35 = vsel %vm318_vm3, %v1287_v15, 0.0 }
 0x3fb   : > { %1319 = vst [vmem:[%s3813_s27 + $0x8] sm:$0xff] %v1303_v35  ;;  %vm1335_vm9 = vcmp.gt.f32.partialorder %v1303_v35, 0.02 }
 0x3fc   : > { %vm1350_vm10 = vmpackc.low %vm1335_vm9, %vm1334_vm8 }
 0x3fd   : > { %vm1352_vm11 = vmpackc.even %vm4015_vm6, %vm1350_vm10 }
 0x3fe   : > { %v1362_v32 = vsel %vm1352_vm11, 16843009, %v3338_v48 }
 0x3ff   : > { %1366 = vst [vmem:[%s4023_s10] sm:$0xff] %v1362_v32 }
 0x47c   : > { %v2251_v59 = vpop.xlane.xlu0 %2250 }
 0x47d   : > { %3240 = vrcp.f32 %v2251_v59 }
 0x480   : > { %v2253_v4 = vpop.xlane.xlu1 %2252 }
 0x481   : > { %3242 = vrcp.f32 %v2253_v4 }
 0x48a   : > { %v3241_v36 = vpop.eup %3240 }
 0x48b   : > { %v2298_v37 = vmul.f32 %v3241_v36, %v2234_v27 }
 0x48d   : > { %v2314_v38 = vsel %vm318_vm3, %v2298_v37, 0.0 }
 0x48e   : > { %v3243_v39 = vpop.eup %3242  ;;  %2700 = vst [vmem:[%s3813_s27 + $0x80] sm:$0xff] %v2314_v38  ;;  %vm2346_vm12 = vcmp.gt.f32.partialorder %v2314_v38, 0.02 }
 0x48f   : > { %v2299_v41 = vmul.f32 %v3243_v39, %v2235_v29 }
 0x491   : > { %v2315_v42 = vsel %vm318_vm3, %v2299_v41, 0.0 }
 0x492   : > { %2701 = vst [vmem:[%s3813_s27 + $0x88] sm:$0xff] %v2315_v42  ;;  %vm2347_vm13 = vcmp.gt.f32.partialorder %v2315_v42, 0.02 }
 0x493   : > { %vm4063_vm14 = vmpackc.low %vm2347_vm13, %vm2346_vm12 }
 0x494   : > { %3257 = shalt.err (!%p3254_p3)
}
 0x495   : > { %s3258_s27 = scalar_lea.hbm %s4054_s15, 4096  ;;  %s3262_s13 = scalar_lea.hbm %s4156_s5, 8192 }
 0x496   : > { %p3259_p4 = scmp.ne.s32.totalorder %s4054_s15, %s3258_s27  ;;  %p3263_p9 = scmp.lt.s32.totalorder %s4054_s15, %s4156_s5 }
 0x497   : > { %p3264_p10 = scmp.lt.s32.totalorder %s3262_s13, %s3258_s27 }
 0x498   : > { %p3260_p7 = pnand %p3259_p4, %p3419_p5 }
 0x499   : > { %p3265_p11 = por %p3264_p10, %p3263_p9 }
 0x49a   : > { %p3261_p8 = pneg %p3260_p7 }
 0x49c   : > { %p3266_p12 = pnand %p3265_p11, %p3261_p8 }
 0x49e   : > { %3269 = shalt.err (!%p3266_p12)
}
 0x49f   : > { %s3340_s19 = smov 128   ;;  %s3341_s22 = smov 8   ;;  %vm2364_vm15 = vmpackc.even %vm4015_vm6, %vm4063_vm14 }
 0x4a0   : > { %3163 = dma.vmem_to_hbm [thread:$0]  (%p3419_p5), %s4056_s12, 4096, %s4054_s15, %s2384_s18, %s3340_s19, %s3340_s19, %s3341_s22   ;;  %v2374_v34 = vsel %vm2364_vm15, 16843009, %v3338_v48 }
 0x4a1   : > { %s4102_s30 = scalar_lea.hbm %s4157_s6, %s2734_s16  ;;  %2716 = vst [vmem:[%s4023_s10 + $0x20] sm:$0xff] %v2374_v34  ;;  %s2389_s12 = scalar_lea.sflag [#allocation6], %s3808_s21 }
 0x4a2   : > { %s3270_s15 = scalar_lea.vmem %s4106_s17, 1024  ;;  %s3342_s0 = smov [#allocation5]  }
 0x4a3   : > { %p3271_p13 = scmp.ne.s32.totalorder %s4106_s17, %s3270_s15  ;;  %s3274_s18 = sshll.u32 %s3342_s0, 4  ;;  %s3275_s18 = int_to_ptr.vmem [resolvable:$false] %s3274_s18 }
 0x4a4   : > { %s3276_s16 = scalar_lea.vmem %s3275_s18, 2048  ;;  %p3277_p2 = scmp.lt.s32.totalorder %s4106_s17, %s3275_s18 }
 0x4a5   : > { %p3272_p0 = pnand %p3271_p13, %p3419_p5  ;;  %p3278_p3 = scmp.lt.s32.totalorder %s3276_s16, %s3270_s15 }
 0x4a7   : > { %p3273_p1 = pneg %p3272_p0  ;;  %p3279_p4 = por %p3278_p3, %p3277_p2 }
 0x4a9   : > { %p3280_p7 = pnand %p3279_p4, %p3273_p1 }
 0x4ab   : > { %3283 = shalt.err (!%p3280_p7)
}
 0x4ac   : > { %s3284_s10 = scalar_lea.hbm %s4102_s30, 1024  ;;  %s3288_s13 = scalar_lea.hbm %s4157_s6, 2048 }
 0x4ad   : > { %p3285_p8 = scmp.ne.s32.totalorder %s4102_s30, %s3284_s10  ;;  %p3289_p11 = scmp.lt.s32.totalorder %s4102_s30, %s4157_s6 }
 0x4ae   : > { %p3290_p12 = scmp.lt.s32.totalorder %s3288_s13, %s3284_s10 }
 0x4af   : > { %p3286_p9 = pnand %p3285_p8, %p3419_p5 }
 0x4b0   : > { %p3291_p13 = por %p3290_p12, %p3289_p11 }
 0x4b1   : > { %p3287_p10 = pneg %p3286_p9 }
 0x4b3   : > { %p3292_p0 = pnand %p3291_p13, %p3287_p10 }
 0x4b5   : > { %3295 = shalt.err (!%p3292_p0)
}
 0x4b6   : > { %3164 = dma.vmem_to_hbm [thread:$0]  (%p3419_p5), %s4106_s17, 1024, %s4102_s30, %s2389_s12, %s3340_s19, %s3340_s19, %s3341_s22  }
 0x4b7 PF: > { %p3174_p1 = scmp.ge.s32.totalorder %s3334_s26, 2  ;;  %s2435_s29 = sand.u32 1, %s3322_s23  }
 0x4b8   : > { %s2436_s27 = scalar_lea.sflag [#allocation4], %s2435_s29 }
 0x4b9   : > { %p3168_p2 = pnand %p3174_p1, %p3423_p6 }
 0x4bb   : > { %p3169_p3 = pneg %p3168_p2 }
 0x4bd   : > { %3313 = dma.done.wait (%p3169_p3), %s2436_s27, 4096  }
 0x4be   : > { %3315 = vsyncadd (%p3169_p3), %s2436_s27, 4294963200  ;;  %s2445_s15 = scalar_lea.sflag [#allocation6], %s2435_s29 }
 0x4bf   : > { %3317 = dma.done.wait (%p3169_p3), %s2445_s15, 1024  }
 0x4c0   : > { %3319 = vsyncadd (%p3169_p3), %s2445_s15, 4294966272  ;;  %p21_p5 = scmp.ge.s32.totalorder %s3406_s28, 4   ;;  %s4164_s23 = smov %s3326_s24 }
 0x4c1   : > { %s4165_s24 = smov %s3330_s25  ;;  %s4166_s25 = smov %s3417_s7 }
 0x4c2   : > { %s4167_s26 = smov %s3406_s28  ;;  %23 = sbr.rel (!%p21_p5) target bundleno = 7 (0x7), region = 95 }
 0x4c7   :  { %2450 = vsyncpa [#allocation4], 1 }
 0x4c8   :  { %2452 = vsyncpa [#allocation4 + $0x1], 1 }
 0x4c9   :  { %2453 = vsyncpa [#allocation6], 1 }
 0x4ca   :  { %2455 = vsyncpa [#allocation6 + $0x1], 1 }

</bundles_post_ra>
